<compile_context>
chip_gen: v5e
topology: v5e:2x2
jax: 0.10.0
libtpu: 0.0.40
codegen_flags: <defaults>
</compile_context>

<pallas_src>
import functools

import jax
import jax.numpy as jnp
from jax.experimental import pallas as pl
from jax.experimental.pallas import tpu as pltpu


def _round_up(x, m):
    return (x + m - 1) // m * m


def _pick_lane_tile(m, preferred):
    """Lane-dim tile: multiple of 128, capped at `preferred`."""
    tm = preferred if m >= preferred else _round_up(m, 128)
    return tm, _round_up(m, tm)


_PARALLEL = pltpu.CompilerParams(dimension_semantics=("parallel",))


# ----------------------------------------------------------------------------
# Pallas kernels
# ----------------------------------------------------------------------------
def _conv1_pool_kernel(w_ref, b_ref, p_ref, o_ref):
    """Fused conv1-as-matmul + bias + ReLU + 2x2/2 max-pool.

    w: (Cout, K)   bf16   b: (Cout, 1) f32
    p: (4, K, TM)  bf16   leading dim = pooling-window corner
    o: (Cout, TM)  bf16   lane-dense pooled activations (TM = pooled pixels)
    """
    w = w_ref[...]
    acc = jnp.dot(w, p_ref[0], preferred_element_type=jnp.float32)
    for c in range(1, 4):
        acc = jnp.maximum(
            acc, jnp.dot(w, p_ref[c], preferred_element_type=jnp.float32))
    # relu(bias + max(conv)) == maxpool(relu(bias + conv)) since bias/relu are
    # monotone and per-channel.
    acc = jnp.maximum(acc + b_ref[...], 0.0)
    o_ref[...] = acc.astype(o_ref.dtype)


def _conv_relu_kernel(w_ref, b_ref, p_ref, o_ref):
    """conv-as-matmul + bias + ReLU; lane-dense (Cout, TM) output."""
    acc = jnp.dot(w_ref[...], p_ref[...], preferred_element_type=jnp.float32)
    acc = jnp.maximum(acc + b_ref[...], 0.0)
    o_ref[...] = acc.astype(o_ref.dtype)


def _fc_head_kernel(a_ref, w1_ref, b1_ref, w2_ref, b2_ref, o_ref, *, n_ch):
    """Fused fc1 + ReLU + fc2 + log_softmax.

    a:  (C, TN, HW) bf16  channel-major conv2 activations (NCHW flatten order)
    w1: (C, HW, F1) bf16  fc1 weight, pre-permuted (no activation transpose)
    b1: (1, F1) f32   w2: (F1, F2) bf16   b2: (1, F2) f32
    o:  (TN, F2) f32  log-probabilities
    """
    acc = jnp.dot(a_ref[0], w1_ref[0], preferred_element_type=jnp.float32)
    for c in range(1, n_ch):
        acc = acc + jnp.dot(a_ref[c], w1_ref[c],
                            preferred_element_type=jnp.float32)
    h = jnp.maximum(acc + b1_ref[...], 0.0)                          # (TN, F1)
    logits = jnp.dot(h.astype(jnp.bfloat16), w2_ref[...],
                     preferred_element_type=jnp.float32) + b2_ref[...]
    m = jnp.max(logits, axis=-1, keepdims=True)
    s = logits - m
    lse = jnp.log(jnp.sum(jnp.exp(s), axis=-1, keepdims=True))
    o_ref[...] = s - lse


# ----------------------------------------------------------------------------
# pallas_call wrappers (tiled over the lane / batch dimension)
# ----------------------------------------------------------------------------
def conv1_relu_pool(w, b, p, *, preferred_tm=512):
    cout, k = w.shape
    m = p.shape[-1]
    tm, mpad = _pick_lane_tile(m, preferred_tm)
    if mpad != m:
        p = jnp.pad(p, ((0, 0), (0, 0), (0, mpad - m)))
    out = pl.pallas_call(
        _conv1_pool_kernel,
        out_shape=jax.ShapeDtypeStruct((cout, mpad), jnp.bfloat16),
        grid=(mpad // tm,),
        in_specs=[
            pl.BlockSpec((cout, k), lambda i: (0, 0)),
            pl.BlockSpec((cout, 1), lambda i: (0, 0)),
            pl.BlockSpec((4, k, tm), lambda i: (0, 0, i)),
        ],
        out_specs=pl.BlockSpec((cout, tm), lambda i: (0, i)),
        compiler_params=_PARALLEL,
    )(w, b, p)
    return out[:, :m]


def conv_relu(w, b, p, *, preferred_tm=512):
    cout, k = w.shape
    m = p.shape[-1]
    tm, mpad = _pick_lane_tile(m, preferred_tm)
    if mpad != m:
        p = jnp.pad(p, ((0, 0), (0, mpad - m)))
    out = pl.pallas_call(
        _conv_relu_kernel,
        out_shape=jax.ShapeDtypeStruct((cout, mpad), jnp.bfloat16),
        grid=(mpad // tm,),
        in_specs=[
            pl.BlockSpec((cout, k), lambda i: (0, 0)),
            pl.BlockSpec((cout, 1), lambda i: (0, 0)),
            pl.BlockSpec((k, tm), lambda i: (0, i)),
        ],
        out_specs=pl.BlockSpec((cout, tm), lambda i: (0, i)),
        compiler_params=_PARALLEL,
    )(w, b, p)
    return out[:, :m]


def fc_head(a, w1, b1, w2, b2, *, preferred_tn=256):
    c, n, hw = a.shape
    f1 = w1.shape[-1]
    f2 = w2.shape[-1]
    tn = preferred_tn if n >= preferred_tn else _round_up(n, 16)
    npad = _round_up(n, tn)
    if npad != n:
        a = jnp.pad(a, ((0, 0), (0, npad - n), (0, 0)))
    out = pl.pallas_call(
        functools.partial(_fc_head_kernel, n_ch=c),
        out_shape=jax.ShapeDtypeStruct((npad, f2), jnp.float32),
        grid=(npad // tn,),
        in_specs=[
            pl.BlockSpec((c, tn, hw), lambda i: (0, i, 0)),
            pl.BlockSpec((c, hw, f1), lambda i: (0, 0, 0)),
            pl.BlockSpec((1, f1), lambda i: (0, 0)),
            pl.BlockSpec((f1, f2), lambda i: (0, 0)),
            pl.BlockSpec((1, f2), lambda i: (0, 0)),
        ],
        out_specs=pl.BlockSpec((tn, f2), lambda i: (i, 0)),
        compiler_params=_PARALLEL,
    )(a, w1, b1, w2, b2)
    return out[:n]


# ----------------------------------------------------------------------------
# Glue: DoReFa quantization (one-time), im2col patch extraction
# ----------------------------------------------------------------------------
def dorefa_quantize_w1(w):
    # DoReFa w_bit=1: sign(w) * E, E = mean(|w|)
    return jnp.sign(w) * jnp.mean(jnp.abs(w))


def prepare_params(params):
    """One-time parameter packing, hoisted out of the per-call forward."""
    w1 = dorefa_quantize_w1(params["conv1_w"]).reshape(10, 25)     # (c,ki,kj) cols
    w2 = dorefa_quantize_w1(params["conv2_w"]).reshape(20, 90)
    f1 = dorefa_quantize_w1(params["fc1_w"])                       # (50, 2000)
    f1 = f1.reshape(50, 20, 100).transpose(1, 2, 0)                # (20, 100, 50)
    f2 = dorefa_quantize_w1(params["fc2_w"]).T                     # (50, 10)
    return {
        "conv1_w": w1.astype(jnp.bfloat16),
        "conv1_b": params["conv1_b"].reshape(10, 1).astype(jnp.float32),
        "conv2_w": w2.astype(jnp.bfloat16),
        "conv2_b": params["conv2_b"].reshape(20, 1).astype(jnp.float32),
        "fc1_w": f1.astype(jnp.bfloat16),
        "fc1_b": params["fc1_b"].reshape(1, 50).astype(jnp.float32),
        "fc2_w": f2.astype(jnp.bfloat16),
        "fc2_b": params["fc2_b"].reshape(1, 10).astype(jnp.float32),
    }


def _conv1_pool_patches(x):
    """x: (N, 28, 28) bf16 -> (4, 25, N*144) corner-split im2col patches.

    P[wr*2+wc, ki*5+kj, n*144+pr*12+pc] = x[n, 2*pr+wr+ki, 2*pc+wc+kj]
    """
    n = x.shape[0]
    taps = []
    for ki in range(5):
        for kj in range(5):
            win = x[:, ki:ki + 24, kj:kj + 24]            # (N, 24, 24)
            win = win.reshape(n, 12, 2, 12, 2)            # (n, pr, wr, pc, wc)
            win = win.transpose(2, 4, 0, 1, 3).reshape(4, n * 144)
            taps.append(win)
    return jnp.stack(taps, axis=1)                        # (4, 25, N*144)


def _conv2_patches(y, n):
    """y: (10, N, 12, 12) -> (90, N*100); row order (c, ki, kj) matches the
    PyTorch conv2 weight reshape (20,10,3,3) -> (20,90)."""
    slabs = [y[:, :, ki:ki + 10, kj:kj + 10]
             for ki in range(3) for kj in range(3)]       # each (10, N, 10, 10)
    return jnp.stack(slabs, axis=1).reshape(90, n * 100)


# ----------------------------------------------------------------------------
# Forward pass
# ----------------------------------------------------------------------------
def convnet_forward(x_nchw, qp):
    """x: (N, 1, 28, 28) f32 -> (N, 10) f32 log-probabilities."""
    n = x_nchw.shape[0]
    x = x_nchw.reshape(n, 28, 28).astype(jnp.bfloat16)

    # conv1(5x5) + ReLU + max_pool2d(2,2), fused.  (act_q a_bit=32 is identity.)
    p1 = _conv1_pool_patches(x)                              # (4, 25, N*144)
    y1 = conv1_relu_pool(qp["conv1_w"], qp["conv1_b"], p1)   # (10, N*144)
    y1 = y1.reshape(10, n, 12, 12)                           # channel-major

    # conv2(3x3) + ReLU
    p2 = _conv2_patches(y1, n)                               # (90, N*100)
    y2 = conv_relu(qp["conv2_w"], qp["conv2_b"], p2)         # (20, N*100)

    # fc1 + ReLU + fc2 + log_softmax, fused.  Channel-major activations already
    # match PyTorch's NCHW view(N, -1); no per-forward transpose required.
    a = y2.reshape(20, n, 100)
    return fc_head(a, qp["fc1_w"], qp["fc1_b"], qp["fc2_w"], qp["fc2_b"])


def init_params(key):
    ks = jax.random.split(key, 8)
    scale = 0.1
    return {
        "conv1_w": scale * jax.random.normal(ks[0], (10, 1, 5, 5), jnp.float32),
        "conv1_b": scale * jax.random.normal(ks[1], (10,), jnp.float32),
        "conv2_w": scale * jax.random.normal(ks[2], (20, 10, 3, 3), jnp.float32),
        "conv2_b": scale * jax.random.normal(ks[3], (20,), jnp.float32),
        "fc1_w": scale * jax.random.normal(ks[4], (50, 20 * 10 * 10), jnp.float32),
        "fc1_b": scale * jax.random.normal(ks[5], (50,), jnp.float32),
        "fc2_w": scale * jax.random.normal(ks[6], (10, 50), jnp.float32),
        "fc2_b": scale * jax.random.normal(ks[7], (10,), jnp.float32),
    }


if __name__ == "__main__":
    key = jax.random.PRNGKey(0)
    pkey, xkey = jax.random.split(key)
    params = init_params(pkey)
    qp = prepare_params(params)          # one-time quantization/packing (hoisted)
    x = jax.random.normal(xkey, (2, 1, 28, 28), jnp.float32)
    out = jax.jit(convnet_forward)(x, qp)
    out = jax.block_until_ready(out)
    assert out.shape == (2, 10)
    assert bool(jnp.all(jnp.isfinite(out)))
    print("KERNEL_OK")
</pallas_src>

<mosaic_0001>
module attributes {stable_mosaic.version = 11 : i64} {
  func.func @_conv1_pool_kernel(%arg0: i32, %arg1: memref<10x25xbf16, #tpu.memory_space<vmem>>, %arg2: memref<10x1xf32, #tpu.memory_space<vmem>>, %arg3: memref<4x25x384xbf16, #tpu.memory_space<vmem>>, %arg4: memref<10x384xbf16, #tpu.memory_space<vmem>>) attributes {dimension_semantics = [#tpu.dimension_semantics<parallel>], iteration_bounds = array<i64: 1>, scalar_prefetch = 0 : i64, scratch_operands = 0 : i64, tpu.core_type = #tpu.core_type<tc>, window_params = [{pipeline_mode = #tpu.pipeline_mode<synchronous>, transform_indices = @transform_0, window_bounds = array<i64: 10, 25>}, {pipeline_mode = #tpu.pipeline_mode<synchronous>, transform_indices = @transform_1, window_bounds = array<i64: 10, 1>}, {transform_indices = @transform_2, window_bounds = array<i64: 4, 25, 384>}, {transform_indices = @transform_3, window_bounds = array<i64: 10, 384>}]} {
    %c0 = arith.constant 0 : index
    %c0_0 = arith.constant 0 : index
    %0 = vector.load %arg1[%c0, %c0_0] : memref<10x25xbf16, #tpu.memory_space<vmem>>, vector<10x25xbf16>
    %c0_1 = arith.constant 0 : index
    %c0_2 = arith.constant 0 : index
    %c0_3 = arith.constant 0 : index
    %1 = vector.load %arg3[%c0_1, %c0_2, %c0_3] : memref<4x25x384xbf16, #tpu.memory_space<vmem>>, vector<1x25x384xbf16>
    %2 = vector.shape_cast %1 : vector<1x25x384xbf16> to vector<25x384xbf16>
    %cst = arith.constant dense<0.000000e+00> : vector<10x384xf32>
    %3 = tpu.matmul %0, %2, %cst {dimension_numbers = #tpu.dot_dimension_numbers<[1], [0], [0], [1], [0, 0, 1, 1], [], []>} : vector<10x25xbf16>, vector<25x384xbf16>, vector<10x384xf32> -> vector<10x384xf32>
    %c1 = arith.constant 1 : index
    %c0_4 = arith.constant 0 : index
    %c0_5 = arith.constant 0 : index
    %4 = vector.load %arg3[%c1, %c0_4, %c0_5] : memref<4x25x384xbf16, #tpu.memory_space<vmem>>, vector<1x25x384xbf16>
    %5 = vector.shape_cast %4 : vector<1x25x384xbf16> to vector<25x384xbf16>
    %cst_6 = arith.constant dense<0.000000e+00> : vector<10x384xf32>
    %6 = tpu.matmul %0, %5, %cst_6 {dimension_numbers = #tpu.dot_dimension_numbers<[1], [0], [0], [1], [0, 0, 1, 1], [], []>} : vector<10x25xbf16>, vector<25x384xbf16>, vector<10x384xf32> -> vector<10x384xf32>
    %7 = arith.maximumf %3, %6 : vector<10x384xf32>
    %c2 = arith.constant 2 : index
    %c0_7 = arith.constant 0 : index
    %c0_8 = arith.constant 0 : index
    %8 = vector.load %arg3[%c2, %c0_7, %c0_8] : memref<4x25x384xbf16, #tpu.memory_space<vmem>>, vector<1x25x384xbf16>
    %9 = vector.shape_cast %8 : vector<1x25x384xbf16> to vector<25x384xbf16>
    %cst_9 = arith.constant dense<0.000000e+00> : vector<10x384xf32>
    %10 = tpu.matmul %0, %9, %cst_9 {dimension_numbers = #tpu.dot_dimension_numbers<[1], [0], [0], [1], [0, 0, 1, 1], [], []>} : vector<10x25xbf16>, vector<25x384xbf16>, vector<10x384xf32> -> vector<10x384xf32>
    %11 = arith.maximumf %7, %10 : vector<10x384xf32>
    %c3 = arith.constant 3 : index
    %c0_10 = arith.constant 0 : index
    %c0_11 = arith.constant 0 : index
    %12 = vector.load %arg3[%c3, %c0_10, %c0_11] : memref<4x25x384xbf16, #tpu.memory_space<vmem>>, vector<1x25x384xbf16>
    %13 = vector.shape_cast %12 : vector<1x25x384xbf16> to vector<25x384xbf16>
    %cst_12 = arith.constant dense<0.000000e+00> : vector<10x384xf32>
    %14 = tpu.matmul %0, %13, %cst_12 {dimension_numbers = #tpu.dot_dimension_numbers<[1], [0], [0], [1], [0, 0, 1, 1], [], []>} : vector<10x25xbf16>, vector<25x384xbf16>, vector<10x384xf32> -> vector<10x384xf32>
    %15 = arith.maximumf %11, %14 : vector<10x384xf32>
    %c0_13 = arith.constant 0 : index
    %c0_14 = arith.constant 0 : index
    %16 = vector.load %arg2[%c0_13, %c0_14] : memref<10x1xf32, #tpu.memory_space<vmem>>, vector<10x1xf32>
    %17 = vector.broadcast %16 : vector<10x1xf32> to vector<10x384xf32>
    %18 = arith.addf %15, %17 : vector<10x384xf32>
    %cst_15 = arith.constant 0.000000e+00 : f32
    %19 = vector.broadcast %cst_15 : f32 to vector<10x384xf32>
    %20 = arith.maximumf %18, %19 : vector<10x384xf32>
    %21 = arith.truncf %20 : vector<10x384xf32> to vector<10x384xbf16>
    %c0_16 = arith.constant 0 : index
    %c0_17 = arith.constant 0 : index
    %22 = vector.load %arg4[%c0_16, %c0_17] : memref<10x384xbf16, #tpu.memory_space<vmem>>, vector<10x384xbf16>
    tpu.vector_store %arg4[%c0_16, %c0_17], %21 {strides = array<i32>} : memref<10x384xbf16, #tpu.memory_space<vmem>>, vector<10x384xbf16>,
    return
  }
  func.func @transform_0(%arg0: i32) -> (i32, i32) {
    %c0_i32 = arith.constant 0 : i32
    %c0_i32_0 = arith.constant 0 : i32
    %c0_i32_1 = arith.constant 0 : i32
    return %c0_i32, %c0_i32_0 : i32, i32
  }
  func.func @transform_1(%arg0: i32) -> (i32, i32) {
    %c0_i32 = arith.constant 0 : i32
    %c0_i32_0 = arith.constant 0 : i32
    %c0_i32_1 = arith.constant 0 : i32
    return %c0_i32, %c0_i32_0 : i32, i32
  }
  func.func @transform_2(%arg0: i32) -> (i32, i32, i32) {
    %c0_i32 = arith.constant 0 : i32
    %c0_i32_0 = arith.constant 0 : i32
    %c0_i32_1 = arith.constant 0 : i32
    return %c0_i32, %c0_i32_0, %arg0 : i32, i32, i32
  }
  func.func @transform_3(%arg0: i32) -> (i32, i32) {
    %c0_i32 = arith.constant 0 : i32
    %c0_i32_0 = arith.constant 0 : i32
    return %c0_i32, %arg0 : i32, i32
  }
}

module attributes {stable_mosaic.version = 11 : i64} {
  func.func @_conv_relu_kernel(%arg0: i32, %arg1: memref<20x90xbf16, #tpu.memory_space<vmem>>, %arg2: memref<20x1xf32, #tpu.memory_space<vmem>>, %arg3: memref<90x256xbf16, #tpu.memory_space<vmem>>, %arg4: memref<20x256xbf16, #tpu.memory_space<vmem>>) attributes {dimension_semantics = [#tpu.dimension_semantics<parallel>], iteration_bounds = array<i64: 1>, scalar_prefetch = 0 : i64, scratch_operands = 0 : i64, tpu.core_type = #tpu.core_type<tc>, window_params = [{pipeline_mode = #tpu.pipeline_mode<synchronous>, transform_indices = @transform_0, window_bounds = array<i64: 20, 90>}, {pipeline_mode = #tpu.pipeline_mode<synchronous>, transform_indices = @transform_1, window_bounds = array<i64: 20, 1>}, {transform_indices = @transform_2, window_bounds = array<i64: 90, 256>}, {transform_indices = @transform_3, window_bounds = array<i64: 20, 256>}]} {
    %c0 = arith.constant 0 : index
    %c0_0 = arith.constant 0 : index
    %0 = vector.load %arg1[%c0, %c0_0] : memref<20x90xbf16, #tpu.memory_space<vmem>>, vector<20x90xbf16>
    %c0_1 = arith.constant 0 : index
    %c0_2 = arith.constant 0 : index
    %1 = vector.load %arg3[%c0_1, %c0_2] : memref<90x256xbf16, #tpu.memory_space<vmem>>, vector<90x256xbf16>
    %cst = arith.constant dense<0.000000e+00> : vector<20x256xf32>
    %2 = tpu.matmul %0, %1, %cst {dimension_numbers = #tpu.dot_dimension_numbers<[1], [0], [0], [1], [0, 0, 1, 1], [], []>} : vector<20x90xbf16>, vector<90x256xbf16>, vector<20x256xf32> -> vector<20x256xf32>
    %c0_3 = arith.constant 0 : index
    %c0_4 = arith.constant 0 : index
    %3 = vector.load %arg2[%c0_3, %c0_4] : memref<20x1xf32, #tpu.memory_space<vmem>>, vector<20x1xf32>
    %4 = vector.broadcast %3 : vector<20x1xf32> to vector<20x256xf32>
    %5 = arith.addf %2, %4 : vector<20x256xf32>
    %cst_5 = arith.constant 0.000000e+00 : f32
    %6 = vector.broadcast %cst_5 : f32 to vector<20x256xf32>
    %7 = arith.maximumf %5, %6 : vector<20x256xf32>
    %8 = arith.truncf %7 : vector<20x256xf32> to vector<20x256xbf16>
    %c0_6 = arith.constant 0 : index
    %c0_7 = arith.constant 0 : index
    %9 = vector.load %arg4[%c0_6, %c0_7] : memref<20x256xbf16, #tpu.memory_space<vmem>>, vector<20x256xbf16>
    tpu.vector_store %arg4[%c0_6, %c0_7], %8 {strides = array<i32>} : memref<20x256xbf16, #tpu.memory_space<vmem>>, vector<20x256xbf16>,
    return
  }
  func.func @transform_0(%arg0: i32) -> (i32, i32) {
    %c0_i32 = arith.constant 0 : i32
    %c0_i32_0 = arith.constant 0 : i32
    %c0_i32_1 = arith.constant 0 : i32
    return %c0_i32, %c0_i32_0 : i32, i32
  }
  func.func @transform_1(%arg0: i32) -> (i32, i32) {
    %c0_i32 = arith.constant 0 : i32
    %c0_i32_0 = arith.constant 0 : i32
    %c0_i32_1 = arith.constant 0 : i32
    return %c0_i32, %c0_i32_0 : i32, i32
  }
  func.func @transform_2(%arg0: i32) -> (i32, i32) {
    %c0_i32 = arith.constant 0 : i32
    %c0_i32_0 = arith.constant 0 : i32
    return %c0_i32, %arg0 : i32, i32
  }
  func.func @transform_3(%arg0: i32) -> (i32, i32) {
    %c0_i32 = arith.constant 0 : i32
    %c0_i32_0 = arith.constant 0 : i32
    return %c0_i32, %arg0 : i32, i32
  }
}

module attributes {stable_mosaic.version = 11 : i64} {
  func.func @_fc_head_kernel(%arg0: i32, %arg1: memref<20x16x100xbf16, #tpu.memory_space<vmem>>, %arg2: memref<20x100x50xbf16, #tpu.memory_space<vmem>>, %arg3: memref<1x50xf32, #tpu.memory_space<vmem>>, %arg4: memref<50x10xbf16, #tpu.memory_space<vmem>>, %arg5: memref<1x10xf32, #tpu.memory_space<vmem>>, %arg6: memref<16x10xf32, #tpu.memory_space<vmem>>) attributes {dimension_semantics = [#tpu.dimension_semantics<parallel>], iteration_bounds = array<i64: 1>, scalar_prefetch = 0 : i64, scratch_operands = 0 : i64, tpu.core_type = #tpu.core_type<tc>, window_params = [{transform_indices = @transform_0, window_bounds = array<i64: 20, 16, 100>}, {pipeline_mode = #tpu.pipeline_mode<synchronous>, transform_indices = @transform_1, window_bounds = array<i64: 20, 100, 50>}, {pipeline_mode = #tpu.pipeline_mode<synchronous>, transform_indices = @transform_2, window_bounds = array<i64: 1, 50>}, {pipeline_mode = #tpu.pipeline_mode<synchronous>, transform_indices = @transform_3, window_bounds = array<i64: 50, 10>}, {pipeline_mode = #tpu.pipeline_mode<synchronous>, transform_indices = @transform_4, window_bounds = array<i64: 1, 10>}, {transform_indices = @transform_5, window_bounds = array<i64: 16, 10>}]} {
    %c0 = arith.constant 0 : index
    %c0_0 = arith.constant 0 : index
    %c0_1 = arith.constant 0 : index
    %0 = vector.load %arg1[%c0, %c0_0, %c0_1] : memref<20x16x100xbf16, #tpu.memory_space<vmem>>, vector<1x16x100xbf16>
    %1 = vector.shape_cast %0 : vector<1x16x100xbf16> to vector<16x100xbf16>
    %c0_2 = arith.constant 0 : index
    %c0_3 = arith.constant 0 : index
    %c0_4 = arith.constant 0 : index
    %2 = vector.load %arg2[%c0_2, %c0_3, %c0_4] : memref<20x100x50xbf16, #tpu.memory_space<vmem>>, vector<1x100x50xbf16>
    %3 = vector.shape_cast %2 : vector<1x100x50xbf16> to vector<100x50xbf16>
    %cst = arith.constant dense<0.000000e+00> : vector<16x50xf32>
    %4 = tpu.matmul %1, %3, %cst {dimension_numbers = #tpu.dot_dimension_numbers<[1], [0], [0], [1], [0, 0, 1, 1], [], []>} : vector<16x100xbf16>, vector<100x50xbf16>, vector<16x50xf32> -> vector<16x50xf32>
    %c1 = arith.constant 1 : index
    %c0_5 = arith.constant 0 : index
    %c0_6 = arith.constant 0 : index
    %5 = vector.load %arg1[%c1, %c0_5, %c0_6] : memref<20x16x100xbf16, #tpu.memory_space<vmem>>, vector<1x16x100xbf16>
    %6 = vector.shape_cast %5 : vector<1x16x100xbf16> to vector<16x100xbf16>
    %c1_7 = arith.constant 1 : index
    %c0_8 = arith.constant 0 : index
    %c0_9 = arith.constant 0 : index
    %7 = vector.load %arg2[%c1_7, %c0_8, %c0_9] : memref<20x100x50xbf16, #tpu.memory_space<vmem>>, vector<1x100x50xbf16>
    %8 = vector.shape_cast %7 : vector<1x100x50xbf16> to vector<100x50xbf16>
    %cst_10 = arith.constant dense<0.000000e+00> : vector<16x50xf32>
    %9 = tpu.matmul %6, %8, %cst_10 {dimension_numbers = #tpu.dot_dimension_numbers<[1], [0], [0], [1], [0, 0, 1, 1], [], []>} : vector<16x100xbf16>, vector<100x50xbf16>, vector<16x50xf32> -> vector<16x50xf32>
    %10 = arith.addf %4, %9 : vector<16x50xf32>
    %c2 = arith.constant 2 : index
    %c0_11 = arith.constant 0 : index
    %c0_12 = arith.constant 0 : index
    %11 = vector.load %arg1[%c2, %c0_11, %c0_12] : memref<20x16x100xbf16, #tpu.memory_space<vmem>>, vector<1x16x100xbf16>
    %12 = vector.shape_cast %11 : vector<1x16x100xbf16> to vector<16x100xbf16>
    %c2_13 = arith.constant 2 : index
    %c0_14 = arith.constant 0 : index
    %c0_15 = arith.constant 0 : index
    %13 = vector.load %arg2[%c2_13, %c0_14, %c0_15] : memref<20x100x50xbf16, #tpu.memory_space<vmem>>, vector<1x100x50xbf16>
    %14 = vector.shape_cast %13 : vector<1x100x50xbf16> to vector<100x50xbf16>
    %cst_16 = arith.constant dense<0.000000e+00> : vector<16x50xf32>
    %15 = tpu.matmul %12, %14, %cst_16 {dimension_numbers = #tpu.dot_dimension_numbers<[1], [0], [0], [1], [0, 0, 1, 1], [], []>} : vector<16x100xbf16>, vector<100x50xbf16>, vector<16x50xf32> -> vector<16x50xf32>
    %16 = arith.addf %10, %15 : vector<16x50xf32>
    %c3 = arith.constant 3 : index
    %c0_17 = arith.constant 0 : index
    %c0_18 = arith.constant 0 : index
    %17 = vector.load %arg1[%c3, %c0_17, %c0_18] : memref<20x16x100xbf16, #tpu.memory_space<vmem>>, vector<1x16x100xbf16>
    %18 = vector.shape_cast %17 : vector<1x16x100xbf16> to vector<16x100xbf16>
    %c3_19 = arith.constant 3 : index
    %c0_20 = arith.constant 0 : index
    %c0_21 = arith.constant 0 : index
    %19 = vector.load %arg2[%c3_19, %c0_20, %c0_21] : memref<20x100x50xbf16, #tpu.memory_space<vmem>>, vector<1x100x50xbf16>
    %20 = vector.shape_cast %19 : vector<1x100x50xbf16> to vector<100x50xbf16>
    %cst_22 = arith.constant dense<0.000000e+00> : vector<16x50xf32>
    %21 = tpu.matmul %18, %20, %cst_22 {dimension_numbers = #tpu.dot_dimension_numbers<[1], [0], [0], [1], [0, 0, 1, 1], [], []>} : vector<16x100xbf16>, vector<100x50xbf16>, vector<16x50xf32> -> vector<16x50xf32>
    %22 = arith.addf %16, %21 : vector<16x50xf32>
    %c4 = arith.constant 4 : index
    %c0_23 = arith.constant 0 : index
    %c0_24 = arith.constant 0 : index
    %23 = vector.load %arg1[%c4, %c0_23, %c0_24] : memref<20x16x100xbf16, #tpu.memory_space<vmem>>, vector<1x16x100xbf16>
    %24 = vector.shape_cast %23 : vector<1x16x100xbf16> to vector<16x100xbf16>
    %c4_25 = arith.constant 4 : index
    %c0_26 = arith.constant 0 : index
    %c0_27 = arith.constant 0 : index
    %25 = vector.load %arg2[%c4_25, %c0_26, %c0_27] : memref<20x100x50xbf16, #tpu.memory_space<vmem>>, vector<1x100x50xbf16>
    %26 = vector.shape_cast %25 : vector<1x100x50xbf16> to vector<100x50xbf16>
    %cst_28 = arith.constant dense<0.000000e+00> : vector<16x50xf32>
    %27 = tpu.matmul %24, %26, %cst_28 {dimension_numbers = #tpu.dot_dimension_numbers<[1], [0], [0], [1], [0, 0, 1, 1], [], []>} : vector<16x100xbf16>, vector<100x50xbf16>, vector<16x50xf32> -> vector<16x50xf32>
    %28 = arith.addf %22, %27 : vector<16x50xf32>
    %c5 = arith.constant 5 : index
    %c0_29 = arith.constant 0 : index
    %c0_30 = arith.constant 0 : index
    %29 = vector.load %arg1[%c5, %c0_29, %c0_30] : memref<20x16x100xbf16, #tpu.memory_space<vmem>>, vector<1x16x100xbf16>
    %30 = vector.shape_cast %29 : vector<1x16x100xbf16> to vector<16x100xbf16>
    %c5_31 = arith.constant 5 : index
    %c0_32 = arith.constant 0 : index
    %c0_33 = arith.constant 0 : index
    %31 = vector.load %arg2[%c5_31, %c0_32, %c0_33] : memref<20x100x50xbf16, #tpu.memory_space<vmem>>, vector<1x100x50xbf16>
    %32 = vector.shape_cast %31 : vector<1x100x50xbf16> to vector<100x50xbf16>
    %cst_34 = arith.constant dense<0.000000e+00> : vector<16x50xf32>
    %33 = tpu.matmul %30, %32, %cst_34 {dimension_numbers = #tpu.dot_dimension_numbers<[1], [0], [0], [1], [0, 0, 1, 1], [], []>} : vector<16x100xbf16>, vector<100x50xbf16>, vector<16x50xf32> -> vector<16x50xf32>
    %34 = arith.addf %28, %33 : vector<16x50xf32>
    %c6 = arith.constant 6 : index
    %c0_35 = arith.constant 0 : index
    %c0_36 = arith.constant 0 : index
    %35 = vector.load %arg1[%c6, %c0_35, %c0_36] : memref<20x16x100xbf16, #tpu.memory_space<vmem>>, vector<1x16x100xbf16>
    %36 = vector.shape_cast %35 : vector<1x16x100xbf16> to vector<16x100xbf16>
    %c6_37 = arith.constant 6 : index
    %c0_38 = arith.constant 0 : index
    %c0_39 = arith.constant 0 : index
    %37 = vector.load %arg2[%c6_37, %c0_38, %c0_39] : memref<20x100x50xbf16, #tpu.memory_space<vmem>>, vector<1x100x50xbf16>
    %38 = vector.shape_cast %37 : vector<1x100x50xbf16> to vector<100x50xbf16>
    %cst_40 = arith.constant dense<0.000000e+00> : vector<16x50xf32>
    %39 = tpu.matmul %36, %38, %cst_40 {dimension_numbers = #tpu.dot_dimension_numbers<[1], [0], [0], [1], [0, 0, 1, 1], [], []>} : vector<16x100xbf16>, vector<100x50xbf16>, vector<16x50xf32> -> vector<16x50xf32>
    %40 = arith.addf %34, %39 : vector<16x50xf32>
    %c7 = arith.constant 7 : index
    %c0_41 = arith.constant 0 : index
    %c0_42 = arith.constant 0 : index
    %41 = vector.load %arg1[%c7, %c0_41, %c0_42] : memref<20x16x100xbf16, #tpu.memory_space<vmem>>, vector<1x16x100xbf16>
    %42 = vector.shape_cast %41 : vector<1x16x100xbf16> to vector<16x100xbf16>
    %c7_43 = arith.constant 7 : index
    %c0_44 = arith.constant 0 : index
    %c0_45 = arith.constant 0 : index
    %43 = vector.load %arg2[%c7_43, %c0_44, %c0_45] : memref<20x100x50xbf16, #tpu.memory_space<vmem>>, vector<1x100x50xbf16>
    %44 = vector.shape_cast %43 : vector<1x100x50xbf16> to vector<100x50xbf16>
    %cst_46 = arith.constant dense<0.000000e+00> : vector<16x50xf32>
    %45 = tpu.matmul %42, %44, %cst_46 {dimension_numbers = #tpu.dot_dimension_numbers<[1], [0], [0], [1], [0, 0, 1, 1], [], []>} : vector<16x100xbf16>, vector<100x50xbf16>, vector<16x50xf32> -> vector<16x50xf32>
    %46 = arith.addf %40, %45 : vector<16x50xf32>
    %c8 = arith.constant 8 : index
    %c0_47 = arith.constant 0 : index
    %c0_48 = arith.constant 0 : index
    %47 = vector.load %arg1[%c8, %c0_47, %c0_48] : memref<20x16x100xbf16, #tpu.memory_space<vmem>>, vector<1x16x100xbf16>
    %48 = vector.shape_cast %47 : vector<1x16x100xbf16> to vector<16x100xbf16>
    %c8_49 = arith.constant 8 : index
    %c0_50 = arith.constant 0 : index
    %c0_51 = arith.constant 0 : index
    %49 = vector.load %arg2[%c8_49, %c0_50, %c0_51] : memref<20x100x50xbf16, #tpu.memory_space<vmem>>, vector<1x100x50xbf16>
    %50 = vector.shape_cast %49 : vector<1x100x50xbf16> to vector<100x50xbf16>
    %cst_52 = arith.constant dense<0.000000e+00> : vector<16x50xf32>
    %51 = tpu.matmul %48, %50, %cst_52 {dimension_numbers = #tpu.dot_dimension_numbers<[1], [0], [0], [1], [0, 0, 1, 1], [], []>} : vector<16x100xbf16>, vector<100x50xbf16>, vector<16x50xf32> -> vector<16x50xf32>
    %52 = arith.addf %46, %51 : vector<16x50xf32>
    %c9 = arith.constant 9 : index
    %c0_53 = arith.constant 0 : index
    %c0_54 = arith.constant 0 : index
    %53 = vector.load %arg1[%c9, %c0_53, %c0_54] : memref<20x16x100xbf16, #tpu.memory_space<vmem>>, vector<1x16x100xbf16>
    %54 = vector.shape_cast %53 : vector<1x16x100xbf16> to vector<16x100xbf16>
    %c9_55 = arith.constant 9 : index
    %c0_56 = arith.constant 0 : index
    %c0_57 = arith.constant 0 : index
    %55 = vector.load %arg2[%c9_55, %c0_56, %c0_57] : memref<20x100x50xbf16, #tpu.memory_space<vmem>>, vector<1x100x50xbf16>
    %56 = vector.shape_cast %55 : vector<1x100x50xbf16> to vector<100x50xbf16>
    %cst_58 = arith.constant dense<0.000000e+00> : vector<16x50xf32>
    %57 = tpu.matmul %54, %56, %cst_58 {dimension_numbers = #tpu.dot_dimension_numbers<[1], [0], [0], [1], [0, 0, 1, 1], [], []>} : vector<16x100xbf16>, vector<100x50xbf16>, vector<16x50xf32> -> vector<16x50xf32>
    %58 = arith.addf %52, %57 : vector<16x50xf32>
    %c10 = arith.constant 10 : index
    %c0_59 = arith.constant 0 : index
    %c0_60 = arith.constant 0 : index
    %59 = vector.load %arg1[%c10, %c0_59, %c0_60] : memref<20x16x100xbf16, #tpu.memory_space<vmem>>, vector<1x16x100xbf16>
    %60 = vector.shape_cast %59 : vector<1x16x100xbf16> to vector<16x100xbf16>
    %c10_61 = arith.constant 10 : index
    %c0_62 = arith.constant 0 : index
    %c0_63 = arith.constant 0 : index
    %61 = vector.load %arg2[%c10_61, %c0_62, %c0_63] : memref<20x100x50xbf16, #tpu.memory_space<vmem>>, vector<1x100x50xbf16>
    %62 = vector.shape_cast %61 : vector<1x100x50xbf16> to vector<100x50xbf16>
    %cst_64 = arith.constant dense<0.000000e+00> : vector<16x50xf32>
    %63 = tpu.matmul %60, %62, %cst_64 {dimension_numbers = #tpu.dot_dimension_numbers<[1], [0], [0], [1], [0, 0, 1, 1], [], []>} : vector<16x100xbf16>, vector<100x50xbf16>, vector<16x50xf32> -> vector<16x50xf32>
    %64 = arith.addf %58, %63 : vector<16x50xf32>
    %c11 = arith.constant 11 : index
    %c0_65 = arith.constant 0 : index
    %c0_66 = arith.constant 0 : index
    %65 = vector.load %arg1[%c11, %c0_65, %c0_66] : memref<20x16x100xbf16, #tpu.memory_space<vmem>>, vector<1x16x100xbf16>
    %66 = vector.shape_cast %65 : vector<1x16x100xbf16> to vector<16x100xbf16>
    %c11_67 = arith.constant 11 : index
    %c0_68 = arith.constant 0 : index
    %c0_69 = arith.constant 0 : index
    %67 = vector.load %arg2[%c11_67, %c0_68, %c0_69] : memref<20x100x50xbf16, #tpu.memory_space<vmem>>, vector<1x100x50xbf16>
    %68 = vector.shape_cast %67 : vector<1x100x50xbf16> to vector<100x50xbf16>
    %cst_70 = arith.constant dense<0.000000e+00> : vector<16x50xf32>
    %69 = tpu.matmul %66, %68, %cst_70 {dimension_numbers = #tpu.dot_dimension_numbers<[1], [0], [0], [1], [0, 0, 1, 1], [], []>} : vector<16x100xbf16>, vector<100x50xbf16>, vector<16x50xf32> -> vector<16x50xf32>
    %70 = arith.addf %64, %69 : vector<16x50xf32>
    %c12 = arith.constant 12 : index
    %c0_71 = arith.constant 0 : index
    %c0_72 = arith.constant 0 : index
    %71 = vector.load %arg1[%c12, %c0_71, %c0_72] : memref<20x16x100xbf16, #tpu.memory_space<vmem>>, vector<1x16x100xbf16>
    %72 = vector.shape_cast %71 : vector<1x16x100xbf16> to vector<16x100xbf16>
    %c12_73 = arith.constant 12 : index
    %c0_74 = arith.constant 0 : index
    %c0_75 = arith.constant 0 : index
    %73 = vector.load %arg2[%c12_73, %c0_74, %c0_75] : memref<20x100x50xbf16, #tpu.memory_space<vmem>>, vector<1x100x50xbf16>
    %74 = vector.shape_cast %73 : vector<1x100x50xbf16> to vector<100x50xbf16>
    %cst_76 = arith.constant dense<0.000000e+00> : vector<16x50xf32>
    %75 = tpu.matmul %72, %74, %cst_76 {dimension_numbers = #tpu.dot_dimension_numbers<[1], [0], [0], [1], [0, 0, 1, 1], [], []>} : vector<16x100xbf16>, vector<100x50xbf16>, vector<16x50xf32> -> vector<16x50xf32>
    %76 = arith.addf %70, %75 : vector<16x50xf32>
    %c13 = arith.constant 13 : index
    %c0_77 = arith.constant 0 : index
    %c0_78 = arith.constant 0 : index
    %77 = vector.load %arg1[%c13, %c0_77, %c0_78] : memref<20x16x100xbf16, #tpu.memory_space<vmem>>, vector<1x16x100xbf16>
    %78 = vector.shape_cast %77 : vector<1x16x100xbf16> to vector<16x100xbf16>
    %c13_79 = arith.constant 13 : index
    %c0_80 = arith.constant 0 : index
    %c0_81 = arith.constant 0 : index
    %79 = vector.load %arg2[%c13_79, %c0_80, %c0_81] : memref<20x100x50xbf16, #tpu.memory_space<vmem>>, vector<1x100x50xbf16>
    %80 = vector.shape_cast %79 : vector<1x100x50xbf16> to vector<100x50xbf16>
    %cst_82 = arith.constant dense<0.000000e+00> : vector<16x50xf32>
    %81 = tpu.matmul %78, %80, %cst_82 {dimension_numbers = #tpu.dot_dimension_numbers<[1], [0], [0], [1], [0, 0, 1, 1], [], []>} : vector<16x100xbf16>, vector<100x50xbf16>, vector<16x50xf32> -> vector<16x50xf32>
    %82 = arith.addf %76, %81 : vector<16x50xf32>
    %c14 = arith.constant 14 : index
    %c0_83 = arith.constant 0 : index
    %c0_84 = arith.constant 0 : index
    %83 = vector.load %arg1[%c14, %c0_83, %c0_84] : memref<20x16x100xbf16, #tpu.memory_space<vmem>>, vector<1x16x100xbf16>
    %84 = vector.shape_cast %83 : vector<1x16x100xbf16> to vector<16x100xbf16>
    %c14_85 = arith.constant 14 : index
    %c0_86 = arith.constant 0 : index
    %c0_87 = arith.constant 0 : index
    %85 = vector.load %arg2[%c14_85, %c0_86, %c0_87] : memref<20x100x50xbf16, #tpu.memory_space<vmem>>, vector<1x100x50xbf16>
    %86 = vector.shape_cast %85 : vector<1x100x50xbf16> to vector<100x50xbf16>
    %cst_88 = arith.constant dense<0.000000e+00> : vector<16x50xf32>
    %87 = tpu.matmul %84, %86, %cst_88 {dimension_numbers = #tpu.dot_dimension_numbers<[1], [0], [0], [1], [0, 0, 1, 1], [], []>} : vector<16x100xbf16>, vector<100x50xbf16>, vector<16x50xf32> -> vector<16x50xf32>
    %88 = arith.addf %82, %87 : vector<16x50xf32>
    %c15 = arith.constant 15 : index
    %c0_89 = arith.constant 0 : index
    %c0_90 = arith.constant 0 : index
    %89 = vector.load %arg1[%c15, %c0_89, %c0_90] : memref<20x16x100xbf16, #tpu.memory_space<vmem>>, vector<1x16x100xbf16>
    %90 = vector.shape_cast %89 : vector<1x16x100xbf16> to vector<16x100xbf16>
    %c15_91 = arith.constant 15 : index
    %c0_92 = arith.constant 0 : index
    %c0_93 = arith.constant 0 : index
    %91 = vector.load %arg2[%c15_91, %c0_92, %c0_93] : memref<20x100x50xbf16, #tpu.memory_space<vmem>>, vector<1x100x50xbf16>
    %92 = vector.shape_cast %91 : vector<1x100x50xbf16> to vector<100x50xbf16>
    %cst_94 = arith.constant dense<0.000000e+00> : vector<16x50xf32>
    %93 = tpu.matmul %90, %92, %cst_94 {dimension_numbers = #tpu.dot_dimension_numbers<[1], [0], [0], [1], [0, 0, 1, 1], [], []>} : vector<16x100xbf16>, vector<100x50xbf16>, vector<16x50xf32> -> vector<16x50xf32>
    %94 = arith.addf %88, %93 : vector<16x50xf32>
    %c16 = arith.constant 16 : index
    %c0_95 = arith.constant 0 : index
    %c0_96 = arith.constant 0 : index
    %95 = vector.load %arg1[%c16, %c0_95, %c0_96] : memref<20x16x100xbf16, #tpu.memory_space<vmem>>, vector<1x16x100xbf16>
    %96 = vector.shape_cast %95 : vector<1x16x100xbf16> to vector<16x100xbf16>
    %c16_97 = arith.constant 16 : index
    %c0_98 = arith.constant 0 : index
    %c0_99 = arith.constant 0 : index
    %97 = vector.load %arg2[%c16_97, %c0_98, %c0_99] : memref<20x100x50xbf16, #tpu.memory_space<vmem>>, vector<1x100x50xbf16>
    %98 = vector.shape_cast %97 : vector<1x100x50xbf16> to vector<100x50xbf16>
    %cst_100 = arith.constant dense<0.000000e+00> : vector<16x50xf32>
    %99 = tpu.matmul %96, %98, %cst_100 {dimension_numbers = #tpu.dot_dimension_numbers<[1], [0], [0], [1], [0, 0, 1, 1], [], []>} : vector<16x100xbf16>, vector<100x50xbf16>, vector<16x50xf32> -> vector<16x50xf32>
    %100 = arith.addf %94, %99 : vector<16x50xf32>
    %c17 = arith.constant 17 : index
    %c0_101 = arith.constant 0 : index
    %c0_102 = arith.constant 0 : index
    %101 = vector.load %arg1[%c17, %c0_101, %c0_102] : memref<20x16x100xbf16, #tpu.memory_space<vmem>>, vector<1x16x100xbf16>
    %102 = vector.shape_cast %101 : vector<1x16x100xbf16> to vector<16x100xbf16>
    %c17_103 = arith.constant 17 : index
    %c0_104 = arith.constant 0 : index
    %c0_105 = arith.constant 0 : index
    %103 = vector.load %arg2[%c17_103, %c0_104, %c0_105] : memref<20x100x50xbf16, #tpu.memory_space<vmem>>, vector<1x100x50xbf16>
    %104 = vector.shape_cast %103 : vector<1x100x50xbf16> to vector<100x50xbf16>
    %cst_106 = arith.constant dense<0.000000e+00> : vector<16x50xf32>
    %105 = tpu.matmul %102, %104, %cst_106 {dimension_numbers = #tpu.dot_dimension_numbers<[1], [0], [0], [1], [0, 0, 1, 1], [], []>} : vector<16x100xbf16>, vector<100x50xbf16>, vector<16x50xf32> -> vector<16x50xf32>
    %106 = arith.addf %100, %105 : vector<16x50xf32>
    %c18 = arith.constant 18 : index
    %c0_107 = arith.constant 0 : index
    %c0_108 = arith.constant 0 : index
    %107 = vector.load %arg1[%c18, %c0_107, %c0_108] : memref<20x16x100xbf16, #tpu.memory_space<vmem>>, vector<1x16x100xbf16>
    %108 = vector.shape_cast %107 : vector<1x16x100xbf16> to vector<16x100xbf16>
    %c18_109 = arith.constant 18 : index
    %c0_110 = arith.constant 0 : index
    %c0_111 = arith.constant 0 : index
    %109 = vector.load %arg2[%c18_109, %c0_110, %c0_111] : memref<20x100x50xbf16, #tpu.memory_space<vmem>>, vector<1x100x50xbf16>
    %110 = vector.shape_cast %109 : vector<1x100x50xbf16> to vector<100x50xbf16>
    %cst_112 = arith.constant dense<0.000000e+00> : vector<16x50xf32>
    %111 = tpu.matmul %108, %110, %cst_112 {dimension_numbers = #tpu.dot_dimension_numbers<[1], [0], [0], [1], [0, 0, 1, 1], [], []>} : vector<16x100xbf16>, vector<100x50xbf16>, vector<16x50xf32> -> vector<16x50xf32>
    %112 = arith.addf %106, %111 : vector<16x50xf32>
    %c19 = arith.constant 19 : index
    %c0_113 = arith.constant 0 : index
    %c0_114 = arith.constant 0 : index
    %113 = vector.load %arg1[%c19, %c0_113, %c0_114] : memref<20x16x100xbf16, #tpu.memory_space<vmem>>, vector<1x16x100xbf16>
    %114 = vector.shape_cast %113 : vector<1x16x100xbf16> to vector<16x100xbf16>
    %c19_115 = arith.constant 19 : index
    %c0_116 = arith.constant 0 : index
    %c0_117 = arith.constant 0 : index
    %115 = vector.load %arg2[%c19_115, %c0_116, %c0_117] : memref<20x100x50xbf16, #tpu.memory_space<vmem>>, vector<1x100x50xbf16>
    %116 = vector.shape_cast %115 : vector<1x100x50xbf16> to vector<100x50xbf16>
    %cst_118 = arith.constant dense<0.000000e+00> : vector<16x50xf32>
    %117 = tpu.matmul %114, %116, %cst_118 {dimension_numbers = #tpu.dot_dimension_numbers<[1], [0], [0], [1], [0, 0, 1, 1], [], []>} : vector<16x100xbf16>, vector<100x50xbf16>, vector<16x50xf32> -> vector<16x50xf32>
    %118 = arith.addf %112, %117 : vector<16x50xf32>
    %c0_119 = arith.constant 0 : index
    %c0_120 = arith.constant 0 : index
    %119 = vector.load %arg3[%c0_119, %c0_120] : memref<1x50xf32, #tpu.memory_space<vmem>>, vector<1x50xf32>
    %120 = vector.broadcast %119 : vector<1x50xf32> to vector<16x50xf32>
    %121 = arith.addf %118, %120 : vector<16x50xf32>
    %cst_121 = arith.constant 0.000000e+00 : f32
    %122 = vector.broadcast %cst_121 : f32 to vector<16x50xf32>
    %123 = arith.maximumf %121, %122 : vector<16x50xf32>
    %124 = arith.truncf %123 : vector<16x50xf32> to vector<16x50xbf16>
    %c0_122 = arith.constant 0 : index
    %c0_123 = arith.constant 0 : index
    %125 = vector.load %arg4[%c0_122, %c0_123] : memref<50x10xbf16, #tpu.memory_space<vmem>>, vector<50x10xbf16>
    %cst_124 = arith.constant dense<0.000000e+00> : vector<16x10xf32>
    %126 = tpu.matmul %124, %125, %cst_124 {dimension_numbers = #tpu.dot_dimension_numbers<[1], [0], [0], [1], [0, 0, 1, 1], [], []>} : vector<16x50xbf16>, vector<50x10xbf16>, vector<16x10xf32> -> vector<16x10xf32>
    %c0_125 = arith.constant 0 : index
    %c0_126 = arith.constant 0 : index
    %127 = vector.load %arg5[%c0_125, %c0_126] : memref<1x10xf32, #tpu.memory_space<vmem>>, vector<1x10xf32>
    %128 = vector.broadcast %127 : vector<1x10xf32> to vector<16x10xf32>
    %129 = arith.addf %126, %128 : vector<16x10xf32>
    %cst_127 = arith.constant dense<0xFF800000> : vector<16xf32>
    %130 = vector.multi_reduction <maximumf>, %129, %cst_127 [1] : vector<16x10xf32> to vector<16xf32>
    %131 = vector.shape_cast %130 : vector<16xf32> to vector<16x1xf32>
    %132 = vector.broadcast %131 : vector<16x1xf32> to vector<16x10xf32>
    %133 = arith.subf %129, %132 : vector<16x10xf32>
    %134 = math.exp %133 : vector<16x10xf32>
    %cst_128 = arith.constant dense<0.000000e+00> : vector<16xf32>
    %135 = vector.multi_reduction <add>, %134, %cst_128 [1] : vector<16x10xf32> to vector<16xf32>
    %136 = vector.shape_cast %135 : vector<16xf32> to vector<16x1xf32>
    %137 = math.log %136 : vector<16x1xf32>
    %138 = vector.broadcast %137 : vector<16x1xf32> to vector<16x10xf32>
    %139 = arith.subf %133, %138 : vector<16x10xf32>
    %c0_129 = arith.constant 0 : index
    %c0_130 = arith.constant 0 : index
    %140 = vector.load %arg6[%c0_129, %c0_130] : memref<16x10xf32, #tpu.memory_space<vmem>>, vector<16x10xf32>
    tpu.vector_store %arg6[%c0_129, %c0_130], %139 {strides = array<i32>} : memref<16x10xf32, #tpu.memory_space<vmem>>, vector<16x10xf32>,
    return
  }
  func.func @transform_0(%arg0: i32) -> (i32, i32, i32) {
    %c0_i32 = arith.constant 0 : i32
    %c0_i32_0 = arith.constant 0 : i32
    %c0_i32_1 = arith.constant 0 : i32
    return %c0_i32, %arg0, %c0_i32_0 : i32, i32, i32
  }
  func.func @transform_1(%arg0: i32) -> (i32, i32, i32) {
    %c0_i32 = arith.constant 0 : i32
    %c0_i32_0 = arith.constant 0 : i32
    %c0_i32_1 = arith.constant 0 : i32
    %c0_i32_2 = arith.constant 0 : i32
    return %c0_i32, %c0_i32_0, %c0_i32_1 : i32, i32, i32
  }
  func.func @transform_2(%arg0: i32) -> (i32, i32) {
    %c0_i32 = arith.constant 0 : i32
    %c0_i32_0 = arith.constant 0 : i32
    %c0_i32_1 = arith.constant 0 : i32
    return %c0_i32, %c0_i32_0 : i32, i32
  }
  func.func @transform_3(%arg0: i32) -> (i32, i32) {
    %c0_i32 = arith.constant 0 : i32
    %c0_i32_0 = arith.constant 0 : i32
    %c0_i32_1 = arith.constant 0 : i32
    return %c0_i32, %c0_i32_0 : i32, i32
  }
  func.func @transform_4(%arg0: i32) -> (i32, i32) {
    %c0_i32 = arith.constant 0 : i32
    %c0_i32_0 = arith.constant 0 : i32
    %c0_i32_1 = arith.constant 0 : i32
    return %c0_i32, %c0_i32_0 : i32, i32
  }
  func.func @transform_5(%arg0: i32) -> (i32, i32) {
    %c0_i32 = arith.constant 0 : i32
    %c0_i32_0 = arith.constant 0 : i32
    return %arg0, %c0_i32 : i32, i32
  }
}

</mosaic_0001>

<bundles_post_ra>
// kernel: convnet_forward.3
= control target key start
LH: loop header
LB: loop body
LE: loop exit
PB: predicated region body
PF: predicated region fallthrough
CT: control target
= control target key end

     0   :  { %vm63_vm0 = vcmask 1043456   ;;  %vm64_vm1 = vcmask 1044480   ;;  %v603_v2 = vmov 65535   ;;  %vm59_vm2 = vcmask 203776   ;;  %s833_s2 = inlined_call_operand.vmem [shape: bf16[4,25,384], index: 2, kind: input, shape index: {}]   ;;  %s834_s0 = inlined_call_operand.vmem [shape: bf16[10,25], index: 0, kind: input, shape index: {}]   ;;  %s835_s1 = inlined_call_operand.vmem [shape: f32[10,1], index: 1, kind: input, shape index: {}]   ;;  %s836_s3 = inlined_call_operand.vmem [shape: bf16[10,384], index: 3, kind: output, shape index: {}]  }
   0x1   :  { %v457_v0 = vld [vmem:[%s833_s2 + $0x18] sm:$0xf]  ;;  %v580_v1 = vld [vmem:[%s833_s2 + $0x20] sm:$0x10]  ;;  %v65_v3 = vsel %vm63_vm0, 4294967295, %v603_v2 }
   0x2   :  { %v458_v4 = vor.u32 %v580_v1, %v457_v0  ;;  %v631_v5 = vsel %vm64_vm1, %v65_v3, 0  ;;  %v579_v6 = vld [vmem:[%s833_s2 + $0x1c] sm:$0xf]  ;;  %v459_v7 = vld [vmem:[%s833_s2 + $0x24] sm:$0x10] }
   0x3   :  { %v462_v8 = vor.u32 %v579_v6, %v459_v7  ;;  %v465_v9 = vld [vmem:[%s833_s2 + $0x20] sm:$0xf]  ;;  %v581_v10 = vld [vmem:[%s833_s2 + $0x28] sm:$0x10]  ;;  %v492_v11 = vld [vmem:[%s833_s2 + $0x48] sm:$0xf] }
   0x4   :  { %v68_v12 = vand.u32 %v458_v4, %v631_v5  ;;  %v466_v13 = vor.u32 %v581_v10, %v465_v9  ;;  %v586_v14 = vld [vmem:[%s833_s2 + $0x50] sm:$0x10]  ;;  %v445_v15 = vld [vmem:[%s833_s2] sm:$0xf]  ;;  %v577_v16 = vld [vmem:[%s833_s2 + $0x8] sm:$0xf0] }
   0x5   :  { %v71_v17 = vand.u32 %v462_v8, %v631_v5  ;;  %v493_v18 = vor.u32 %v586_v14, %v492_v11  ;;  %v576_v19 = vld [vmem:[%s833_s2 + $0x4] sm:$0xf]  ;;  %v447_v20 = vld [vmem:[%s833_s2 + $0xc] sm:$0xf0]  ;;  %v453_v21 = vld [vmem:[%s833_s2 + $0x8] sm:$0xf]  ;;  %v446_v23 = vor.u32 %v577_v16, %v445_v15 }
   0x6   :  { %82 = vmatpush.bf16.msra.mxu0 %v68_v12  ;;  %v74_v22 = vand.u32 %v466_v13, %v631_v5  ;;  %v578_v24 = vld [vmem:[%s833_s2 + $0x10] sm:$0xf0]  ;;  %v480_v25 = vld [vmem:[%s833_s2 + $0x30] sm:$0xf]  ;;  %v583_v26 = vld [vmem:[%s833_s2 + $0x38] sm:$0xf0]  ;;  %v450_v28 = vor.u32 %v576_v19, %v447_v20 }
   0x7   :  { %96 = vmatpush.bf16.msra.mxu1 %v71_v17  ;;  %v157_v27 = vand.u32 %v493_v18, %v631_v5  ;;  %v441_v29 = vld [vmem:[%s834_s0] sm:$0xf]  ;;  %v575_v30 = vld [vmem:[%s834_s0] sm:$0x10]  ;;  %v527_v31 = vld [vmem:[%s833_s2 + $0x78] sm:$0xf]  ;;  %v454_v32 = vor.u32 %v578_v24, %v453_v21  ;;  %v481_v36 = vor.u32 %v583_v26, %v480_v25 }
   0x8   :  { %110 = vmatpush.bf16.msra.mxu2 %v74_v22  ;;  %v592_v33 = vld [vmem:[%s833_s2 + $0x80] sm:$0x10]  ;;  %v591_v34 = vld [vmem:[%s833_s2 + $0x7c] sm:$0xf]  ;;  %v529_v35 = vld [vmem:[%s833_s2 + $0x84] sm:$0x10]  ;;  %v697_v37 = vor.u32 %v575_v30, %v441_v29 }
   0x9   :  { %171 = vmatpush.bf16.msra.mxu3 %v157_v27  ;;  %v528_v38 = vor.u32 %v592_v33, %v527_v31  ;;  %v532_v39 = vor.u32 %v591_v34, %v529_v35  ;;  %v585_v40 = vld [vmem:[%s833_s2 + $0x4c] sm:$0xf]  ;;  %v494_v41 = vld [vmem:[%s833_s2 + $0x54] sm:$0x10]  ;;  %v500_v42 = vld [vmem:[%s833_s2 + $0x50] sm:$0xf] }
   0xa   :  { %83 = vmatpush.bf16.msra.mxu0 %v446_v23  ;;  %v497_v43 = vor.u32 %v585_v40, %v494_v41  ;;  %v587_v44 = vld [vmem:[%s833_s2 + $0x58] sm:$0x10]  ;;  %v515_v45 = vld [vmem:[%s833_s2 + $0x60] sm:$0xf]  ;;  %v589_v46 = vld [vmem:[%s833_s2 + $0x68] sm:$0xf0] }
   0xb   :  { %97 = vmatpush.bf16.msra.mxu1 %v450_v28  ;;  %v252_v47 = vand.u32 %v528_v38, %v631_v5  ;;  %v255_v48 = vand.u32 %v532_v39, %v631_v5  ;;  %v501_v49 = vor.u32 %v587_v44, %v500_v42  ;;  %v588_v50 = vld [vmem:[%s833_s2 + $0x64] sm:$0xf]  ;;  %v517_v51 = vld [vmem:[%s833_s2 + $0x6c] sm:$0xf0]  ;;  %v582_v52 = vld [vmem:[%s833_s2 + $0x34] sm:$0xf]  ;;  %v516_v61 = vor.u32 %v589_v46, %v515_v45 }
   0xc   :  { %111 = vmatpush.bf16.msra.mxu2 %v454_v32  ;;  %v160_v53 = vand.u32 %v497_v43, %v631_v5  ;;  %v482_v54 = vld [vmem:[%s833_s2 + $0x3c] sm:$0xf0]  ;;  %v488_v55 = vld [vmem:[%s833_s2 + $0x38] sm:$0xf]  ;;  %v584_v56 = vld [vmem:[%s833_s2 + $0x40] sm:$0xf0]  ;;  %v520_v2 = vor.u32 %v588_v50, %v517_v51 }
   0xd   :  { %172 = vmatpush.bf16.msra.mxu3 %v481_v36  ;;  %467 = vmatmul.msk.bf16.vlgmr.msra.gmra.mxu0 %vm59_vm2, %v697_v37  ;;  %v163_v57 = vand.u32 %v501_v49, %v631_v5  ;;  %v597_v58 = vld [vmem:[%s833_s2 + $0xac] sm:$0xf]  ;;  %v564_v59 = vld [vmem:[%s833_s2 + $0xb4] sm:$0x10]  ;;  %v570_v60 = vld [vmem:[%s833_s2 + $0xb0] sm:$0xf]  ;;  %v485_v8 = vor.u32 %v582_v52, %v482_v54  ;;  %v489_v13 = vor.u32 %v584_v56, %v488_v55 }
   0xe   :  { %468 = vmatmul.msk.bf16.vlgmr.msra.gmra.mxu1 %vm59_vm2, %v697_v37  ;;  %v567_v62 = vor.u32 %v597_v58, %v564_v59  ;;  %v599_v63 = vld [vmem:[%s833_s2 + $0xb8] sm:$0x10]  ;;  %v535_v0 = vld [vmem:[%s833_s2 + $0x80] sm:$0xf]  ;;  %v593_v1 = vld [vmem:[%s833_s2 + $0x88] sm:$0x10]  ;;  %185 = vmatpush.bf16.msrb.mxu0 %v160_v53 }
   0xf   :  { %469 = vmatmul.msk.bf16.vlgmr.msra.gmra.mxu2 %vm59_vm2, %v697_v37  ;;  %v571_v3 = vor.u32 %v599_v63, %v570_v60  ;;  %v536_v4 = vor.u32 %v593_v1, %v535_v0  ;;  %v562_v6 = vld [vmem:[%s833_s2 + $0xa8] sm:$0xf]  ;;  %v598_v7 = vld [vmem:[%s833_s2 + $0xb0] sm:$0x10]  ;;  %v552_v12 = vld [vmem:[%s833_s2 + $0x9c] sm:$0xf0]  ;;  %199 = vmatpush.bf16.msrb.mxu1 %v163_v57 }
  0x10   :  { %266 = vmatpush.bf16.msrb.mxu2 %v252_v47  ;;  %502 = vmatmul.msk.bf16.vlgmr.msra.gmra.mxu3 %vm59_vm2, %v697_v37  ;;  %v350_v9 = vand.u32 %v567_v62, %v631_v5  ;;  %v563_v10 = vor.u32 %v598_v7, %v562_v6  ;;  %v594_v11 = vld [vmem:[%s833_s2 + $0x94] sm:$0xf]  ;;  %v558_v16 = vld [vmem:[%s833_s2 + $0x98] sm:$0xf]  ;;  %v596_v17 = vld [vmem:[%s833_s2 + $0xa0] sm:$0xf0] }
  0x11   :  { %280 = vmatpush.bf16.msrb.mxu3 %v255_v48  ;;  %v353_v14 = vand.u32 %v571_v3, %v631_v5  ;;  %v258_v15 = vand.u32 %v536_v4, %v631_v5  ;;  %v523_v19 = vld [vmem:[%s833_s2 + $0x68] sm:$0xf]  ;;  %v590_v20 = vld [vmem:[%s833_s2 + $0x70] sm:$0xf0]  ;;  %v555_v21 = vor.u32 %v594_v11, %v552_v12  ;;  %v550_v22 = vld [vmem:[%s833_s2 + $0x90] sm:$0xf] }
  0x12   :  { %v347_v18 = vand.u32 %v563_v10, %v631_v5  ;;  %v595_v23 = vld [vmem:[%s833_s2 + $0x98] sm:$0xf0]  ;;  %186 = vmatpush.bf16.msrb.mxu0 %v485_v8  ;;  %v559_v5 = vor.u32 %v596_v17, %v558_v16  ;;  %v403_v24 = vld [vmem:[%s835_s1] sm:$0xff]  ;;  %v524_v25 = vor.u32 %v590_v20, %v523_v19  ;;  %v604_v27 = vmov 0   ;;  %v404_v28 = vld [vmem:[%s835_s1 + $0x8] sm:$0x3] }
  0x13   :  { %200 = vmatpush.bf16.msrb.mxu1 %v489_v13  ;;  %v551_v26 = vor.u32 %v595_v23, %v550_v22  ;;  %602 = vset.pattern.permute.xlu0 %v604_v27 }
  0x14   :  { %267 = vmatpush.bf16.msrb.mxu2 %v516_v61  ;;  %407 = vperm.xlu0 %602, %v403_v24  }
  0x15   :  { %281 = vmatpush.bf16.msrb.mxu3 %v520_v2 }
  0x16   :  { %294 = vmatpush.bf16.msra.mxu0 %v258_v15 }
  0x17   :  { %361 = vmatpush.bf16.msra.mxu1 %v347_v18 }
  0x18   :  { %375 = vmatpush.bf16.msra.mxu2 %v350_v9 }
  0x19   :  { %389 = vmatpush.bf16.msra.mxu3 %v353_v14 }
  0x1a   :  { %295 = vmatpush.bf16.msra.mxu0 %v524_v25 }
  0x1b   :  { %362 = vmatpush.bf16.msra.mxu1 %v551_v26 }
  0x1c   :  { %376 = vmatpush.bf16.msra.mxu2 %v555_v21  ;;  %412 = vperm.xlu0 %602, %v404_v28  }
  0x1d   :  { %390 = vmatpush.bf16.msra.mxu3 %v559_v5  ;;  %503 = vmatmul.msk.bf16.vlgmr.msrb.gmra.mxu0 %vm59_vm2, %v697_v37 }
  0x1e   :  { %504 = vmatmul.msk.bf16.vlgmr.msrb.gmra.mxu1 %vm59_vm2, %v697_v37 }
  0x1f   :  { %537 = vmatmul.msk.bf16.vlgmr.msrb.gmra.mxu2 %vm59_vm2, %v697_v37 }
  0x20   :  { %538 = vmatmul.msk.bf16.vlgmr.msrb.gmra.mxu3 %vm59_vm2, %v697_v37 }
  0x2d   :  { %539 = vmatmul.msk.bf16.vlgmr.msra.gmra.mxu0 %vm59_vm2, %v697_v37 }
  0x2e   :  { %572 = vmatmul.msk.bf16.vlgmr.msra.gmra.mxu1 %vm59_vm2, %v697_v37 }
  0x2f   :  { %573 = vmatmul.msk.bf16.vlgmr.msra.gmra.mxu2 %vm59_vm2, %v697_v37 }
  0x30   :  { %574 = vmatmul.msk.bf16.vlgmr.msra.gmra.mxu3 %vm59_vm2, %v697_v37 }
  0x86   :  { %v408_v52 = vpop.permute.xlu0 %407 }
  0x8a   :  { %v85_v29 = vpop.f32.mrf.mxu0 }
  0x8b   :  { %v99_v30 = vpop.f32.mrf.mxu1 }
  0x8e   :  { %v413_v12 = vpop.permute.xlu0 %412 }
  0x92   :  { %v113_v31 = vpop.f32.mrf.mxu2  ;;  %v87_v32 = vpop.f32.mrf.mxu0 }
  0x93   :  { %v174_v33 = vpop.f32.mrf.mxu3  ;;  %v101_v34 = vpop.f32.mrf.mxu1 }
  0x94   :  { %v207_v45 = vmax.f32 %v85_v29, %v174_v33 }
  0x9a   :  { %v115_v35 = vpop.f32.mrf.mxu2  ;;  %v188_v36 = vpop.f32.mrf.mxu0 }
  0x9b   :  { %v176_v38 = vpop.f32.mrf.mxu3  ;;  %v202_v39 = vpop.f32.mrf.mxu1  ;;  %v208_v49 = vmax.f32 %v99_v30, %v188_v36 }
  0x9c   :  { %v209_v51 = vmax.f32 %v113_v31, %v202_v39  ;;  %v210_v56 = vmax.f32 %v87_v32, %v176_v38 }
  0xa2   :  { %v269_v40 = vpop.f32.mrf.mxu2  ;;  %v190_v41 = vpop.f32.mrf.mxu0 }
  0xa3   :  { %v283_v42 = vpop.f32.mrf.mxu3  ;;  %v204_v43 = vpop.f32.mrf.mxu1  ;;  %v302_v48 = vmax.f32 %v207_v45, %v269_v40  ;;  %v211_v1 = vmax.f32 %v101_v34, %v190_v41 }
  0xa4   :  { %v303_v53 = vmax.f32 %v208_v49, %v283_v42  ;;  %v212_v7 = vmax.f32 %v115_v35, %v204_v43 }
  0xaa   :  { %v271_v44 = vpop.f32.mrf.mxu2  ;;  %v297_v37 = vpop.f32.mrf.mxu0 }
  0xab   :  { %v285_v46 = vpop.f32.mrf.mxu3  ;;  %v364_v47 = vpop.f32.mrf.mxu1  ;;  %v304_v54 = vmax.f32 %v209_v51, %v297_v37  ;;  %v305_v62 = vmax.f32 %v210_v56, %v271_v44 }
  0xac   :  { %v397_v50 = vmax.f32 %v302_v48, %v364_v47  ;;  %v306_v9 = vmax.f32 %v211_v1, %v285_v46 }
  0xae   :  { %v415_v57 = vadd.f32 %v408_v52, %v397_v50 }
  0xb0   :  { %v421_v2 = vmax.f32 %v415_v57, 0.0 }
  0xb2   :  { %v378_v55 = vpop.f32.mrf.mxu2  ;;  %v299_v4 = vpop.f32.mrf.mxu0 }
  0xb3   :  { %v398_v58 = vmax.f32 %v303_v53, %v378_v55  ;;  %v392_v59 = vpop.f32.mrf.mxu3  ;;  %v366_v61 = vpop.f32.mrf.mxu1  ;;  %v307_v13 = vmax.f32 %v212_v7, %v299_v4 }
  0xb4   :  { %v399_v60 = vmax.f32 %v304_v54, %v392_v59  ;;  %v400_v6 = vmax.f32 %v305_v62, %v366_v61 }
  0xb5   :  { %v416_v63 = vadd.f32 %v408_v52, %v398_v58 }
  0xb6   :  { %v417_v0 = vadd.f32 %v408_v52, %v399_v60  ;;  %v418_v15 = vadd.f32 %v413_v12, %v400_v6 }
  0xb7   :  { %v422_v3 = vmax.f32 %v416_v63, 0.0 }
  0xb8   :  { %v423_v8 = vmax.f32 %v417_v0, 0.0  ;;  %v424_v21 = vmax.f32 %v418_v15, 0.0 }
  0xb9   :  { %v427_v10 = vpack.c.bf16 %v422_v3, %v421_v2 }
  0xba   :  { %v428_v11 = vpack.c.bf16 %v423_v8, %v423_v8  ;;  %v380_v14 = vpop.f32.mrf.mxu2 }
  0xbb   :  { %431 = vst [vmem:[%s836_s3] sm:$0xff] %v427_v10  ;;  %v401_v16 = vmax.f32 %v306_v9, %v380_v14  ;;  %v394_v17 = vpop.f32.mrf.mxu3 }
  0xbc   :  { %432 = vst [vmem:[%s836_s3 + $0x8] sm:$0xf] %v428_v11  ;;  %v402_v18 = vmax.f32 %v307_v13, %v394_v17 }
  0xbd   :  { %v419_v19 = vadd.f32 %v413_v12, %v401_v16 }
  0xbe   :  { %v420_v20 = vadd.f32 %v413_v12, %v402_v18 }
  0xbf   :  { %v425_v22 = vmax.f32 %v419_v19, 0.0 }
  0xc0   :  { %v426_v23 = vmax.f32 %v420_v20, 0.0 }
  0xc1   :  { %v429_v5 = vpack.c.bf16 %v425_v22, %v424_v21 }
  0xc2   :  { %v430_v24 = vpack.c.bf16 %v426_v23, %v426_v23 }
  0xc3   :  { %433 = vst [vmem:[%s836_s3 + $0xc] sm:$0x11] %v429_v5 }
  0xc4   :  { %434 = vst [vmem:[%s836_s3 + $0x14] sm:$0x1] %v430_v24 }

// kernel: convnet_forward.4
= control target key start
LH: loop header
LB: loop body
LE: loop exit
PB: predicated region body
PF: predicated region fallthrough
CT: control target
= control target key end

     0   :  { %vm121_vm0 = vcmask 1044480   ;;  %v264_v3 = vmov 0   ;;  %vm114_vm1 = vcmask 736256   ;;  %s383_s2 = inlined_call_operand.vmem [shape: bf16[90,256], index: 2, kind: input, shape index: {}]   ;;  %s384_s1 = inlined_call_operand.vmem [shape: f32[20,1], index: 1, kind: input, shape index: {}]   ;;  %s385_s0 = inlined_call_operand.vmem [shape: bf16[20,90], index: 0, kind: input, shape index: {}]   ;;  %s386_s3 = inlined_call_operand.vmem [shape: bf16[20,256], index: 3, kind: output, shape index: {}]  }
   0x1   :  { %v226_v0 = vld [vmem:[%s383_s2 + $0x50] sm:$0xf]  ;;  %v248_v1 = vld [vmem:[%s383_s2 + $0x54] sm:$0x10]  ;;  %v247_v2 = vld [vmem:[%s383_s2 + $0x54] sm:$0xf]  ;;  %262 = vset.pattern.permute.xlu0 %v264_v3  ;;  %263 = vset.pattern.permute.xlu1 %v264_v3 }
   0x2   :  { %v227_v4 = vor.u32 %v248_v1, %v226_v0  ;;  %v228_v5 = vld [vmem:[%s383_s2 + $0x58] sm:$0x10]  ;;  %v218_v6 = vld [vmem:[%s383_s2 + $0x40] sm:$0xf]  ;;  %v246_v7 = vld [vmem:[%s383_s2 + $0x44] sm:$0xf0] }
   0x3   :  { %v231_v8 = vor.u32 %v247_v2, %v228_v5  ;;  %v245_v9 = vld [vmem:[%s383_s2 + $0x44] sm:$0xf]  ;;  %v220_v10 = vld [vmem:[%s383_s2 + $0x48] sm:$0xf0]  ;;  %v219_v13 = vor.u32 %v246_v7, %v218_v6  ;;  %v210_v16 = vld [vmem:[%s383_s2 + $0x30] sm:$0xf] }
   0x4   :  { %v123_v11 = vsel %vm121_vm0, %v227_v4, 0  ;;  %v30_v14 = vld [vmem:[%s384_s1] sm:$0xff]  ;;  %v223_v15 = vor.u32 %v245_v9, %v220_v10  ;;  %v244_v17 = vld [vmem:[%s383_s2 + $0x34] sm:$0xf0]  ;;  %v243_v18 = vld [vmem:[%s383_s2 + $0x34] sm:$0xf] }
   0x5   :  { %130 = vmatpush.bf16.msra.mxu0 %v123_v11  ;;  %249 = vmatpush.bf16.msra.mxu2 %v123_v11  ;;  %v126_v12 = vsel %vm121_vm0, %v231_v8, 0  ;;  %v212_v19 = vld [vmem:[%s383_s2 + $0x38] sm:$0xf0]  ;;  %v211_v20 = vor.u32 %v244_v17, %v210_v16  ;;  %v202_v22 = vld [vmem:[%s383_s2 + $0x20] sm:$0xf]  ;;  %v31_v27 = vld [vmem:[%s384_s1 + $0x8] sm:$0xff] }
   0x6   :  { %148 = vmatpush.bf16.msra.mxu1 %v126_v12  ;;  %255 = vmatpush.bf16.msra.mxu3 %v126_v12  ;;  %v215_v21 = vor.u32 %v243_v18, %v212_v19  ;;  %v242_v23 = vld [vmem:[%s383_s2 + $0x24] sm:$0xf0]  ;;  %v32_v24 = vld [vmem:[%s384_s1 + $0x10] sm:$0xf]  ;;  %v241_v25 = vld [vmem:[%s383_s2 + $0x24] sm:$0xf] }
   0x7   :  { %35 = vperm.xlu0 %262, %v30_v14   ;;  %v204_v26 = vld [vmem:[%s383_s2 + $0x28] sm:$0xf0]  ;;  %45 = vperm.xlu1 %263, %v32_v24   ;;  %v203_v28 = vor.u32 %v242_v23, %v202_v22  ;;  %v194_v30 = vld [vmem:[%s383_s2 + $0x10] sm:$0xf]  ;;  %v240_v31 = vld [vmem:[%s383_s2 + $0x14] sm:$0xf0] }
   0x8   :  { %v207_v29 = vor.u32 %v241_v25, %v204_v26  ;;  %v239_v32 = vld [vmem:[%s383_s2 + $0x14] sm:$0xf]  ;;  %v196_v33 = vld [vmem:[%s383_s2 + $0x18] sm:$0xf0]  ;;  %v195_v34 = vor.u32 %v240_v31, %v194_v30  ;;  %v17_v35 = vld [vmem:[%s385_s0 + $0x8] sm:$0x3] }
   0x9   :  { %131 = vmatpush.bf16.msra.mxu0 %v219_v13  ;;  %250 = vmatpush.bf16.msra.mxu2 %v219_v13  ;;  %v199_v36 = vor.u32 %v239_v32, %v196_v33  ;;  %v186_v37 = vld [vmem:[%s383_s2] sm:$0xf]  ;;  %v238_v38 = vld [vmem:[%s383_s2 + $0x4] sm:$0xf0]  ;;  %v237_v39 = vld [vmem:[%s383_s2 + $0x4] sm:$0xf]  ;;  %v53_v41 = vunpack.c.l.b16 %v17_v35 }
   0xa   :  { %149 = vmatpush.bf16.msra.mxu1 %v223_v15  ;;  %256 = vmatpush.bf16.msra.mxu3 %v223_v15  ;;  %v188_v40 = vld [vmem:[%s383_s2 + $0x8] sm:$0xf0]  ;;  %v187_v42 = vor.u32 %v238_v38, %v186_v37  ;;  %v236_v44 = vld [vmem:[%s385_s0] sm:$0xff] }
   0xb   :  { %v191_v43 = vor.u32 %v237_v39, %v188_v40  ;;  %v55_v45 = vpack.c.b16 %v53_v41, %v53_v41 }
   0xd   :  { %132 = vmatpush.bf16.msra.mxu0 %v211_v20  ;;  %251 = vmatpush.bf16.msra.mxu2 %v211_v20 }
   0xe   :  { %150 = vmatpush.bf16.msra.mxu1 %v215_v21  ;;  %257 = vmatpush.bf16.msra.mxu3 %v215_v21 }
   0xf   :  { %40 = vperm.xlu0 %262, %v31_v27  }
  0x11   :  { %133 = vmatpush.bf16.msra.mxu0 %v203_v28  ;;  %252 = vmatpush.bf16.msra.mxu2 %v203_v28 }
  0x12   :  { %151 = vmatpush.bf16.msra.mxu1 %v207_v29  ;;  %258 = vmatpush.bf16.msra.mxu3 %v207_v29 }
  0x15   :  { %134 = vmatpush.bf16.msra.mxu0 %v195_v34  ;;  %253 = vmatpush.bf16.msra.mxu2 %v195_v34 }
  0x16   :  { %152 = vmatpush.bf16.msra.mxu1 %v199_v36  ;;  %259 = vmatpush.bf16.msra.mxu3 %v199_v36 }
  0x19   :  { %135 = vmatpush.bf16.msra.mxu0 %v187_v42  ;;  %254 = vmatpush.bf16.msra.mxu2 %v187_v42 }
  0x1a   :  { %153 = vmatpush.bf16.msra.mxu1 %v191_v43  ;;  %260 = vmatpush.bf16.msra.mxu3 %v191_v43 }
  0x1c   :  { %232 = vmatmul.msk.bf16.vlgmr.msra.gmra.mxu0 %vm114_vm1, %v236_v44  ;;  %233 = vmatmul.msk.bf16.vlgmr.msra.gmra.mxu2 %vm114_vm1, %v55_v45 }
  0x1d   :  { %234 = vmatmul.msk.bf16.vlgmr.msra.gmra.mxu1 %vm114_vm1, %v236_v44  ;;  %235 = vmatmul.msk.bf16.vlgmr.msra.gmra.mxu3 %vm114_vm1, %v55_v45 }
  0x79   :  { %v36_v46 = vpop.permute.xlu0 %35  ;;  %v46_v53 = vpop.permute.xlu1 %45 }
  0x81   :  { %v41_v58 = vpop.permute.xlu0 %40 }
  0x99   :  { %v137_v47 = vpop.f32.mrf.mxu0 }
  0x9a   :  { %v138_v48 = vadd.f32 %v137_v47, %v36_v46  ;;  %v155_v49 = vpop.f32.mrf.mxu1 }
  0x9b   :  { %v156_v50 = vadd.f32 %v155_v49, %v36_v46 }
  0x9c   :  { %v164_v51 = vmax.f32 %v138_v48, 0.0 }
  0x9d   :  { %v165_v52 = vmax.f32 %v156_v50, 0.0 }
  0x9f   :  { %v170_v54 = vpack.c.bf16 %v165_v52, %v164_v51  ;;  %v142_v55 = vpop.f32.mrf.mxu2 }
  0xa0   :  { %v160_v56 = vpop.f32.mrf.mxu3  ;;  %v143_v57 = vadd.f32 %v142_v55, %v46_v53 }
  0xa1   :  { %173 = vst [vmem:[%s386_s3] sm:$0xff] %v170_v54  ;;  %v161_v59 = vadd.f32 %v160_v56, %v46_v53  ;;  %v139_v60 = vpop.f32.mrf.mxu0 }
  0xa2   :  { %v168_v61 = vmax.f32 %v143_v57, 0.0  ;;  %v140_v62 = vadd.f32 %v139_v60, %v41_v58  ;;  %v157_v63 = vpop.f32.mrf.mxu1 }
  0xa3   :  { %v169_v0 = vmax.f32 %v161_v59, 0.0  ;;  %v158_v1 = vadd.f32 %v157_v63, %v41_v58 }
  0xa4   :  { %v166_v2 = vmax.f32 %v140_v62, 0.0 }
  0xa5   :  { %v172_v3 = vpack.c.bf16 %v169_v0, %v168_v61  ;;  %v167_v4 = vmax.f32 %v158_v1, 0.0 }
  0xa7   :  { %175 = vst [vmem:[%s386_s3 + $0x10] sm:$0x33] %v172_v3  ;;  %v171_v5 = vpack.c.bf16 %v167_v4, %v166_v2  ;;  %v144_v6 = vpop.f32.mrf.mxu2 }
  0xa8   :  { %v162_v7 = vpop.f32.mrf.mxu3 }
  0xa9   :  { %174 = vst [vmem:[%s386_s3 + $0x8] sm:$0xff] %v171_v5 }

// kernel: convnet_forward.5
= control target key start
LH: loop header
LB: loop body
LE: loop exit
PB: predicated region body
PF: predicated region fallthrough
CT: control target
= control target key end

     0   :  { %vm101_vm0 = vcmask 1041408   ;;  %vm97_vm1 = vcmask 818176   ;;  %vm1722_vm2 = vcmask 1040384   ;;  %vm1718_vm3 = vcmask 408576   ;;  %s3382_s1 = inlined_call_operand.vmem [shape: bf16[20,100,50], index: 1, kind: input, shape index: {}]   ;;  %s3383_s0 = inlined_call_operand.vmem [shape: bf16[20,16,100], index: 0, kind: input, shape index: {}]   ;;  %s3384_s2 = inlined_call_operand.vmem [shape: f32[1,50], index: 2, kind: input, shape index: {}]   ;;  %s3385_s4 = inlined_call_operand.vmem [shape: f32[1,10], index: 4, kind: input, shape index: {}]   ;;  %s3386_s3 = inlined_call_operand.vmem [shape: bf16[50,10], index: 3, kind: input, shape index: {}]   ;;  %s3387_s5 = inlined_call_operand.vmem [shape: f32[16,10], index: 5, kind: output, shape index: {}]  }
   0x1   :  { %v1785_v0 = vld [vmem:[%s3382_s1 + $0x64] sm:$0x3]  ;;  %v35_v1 = vld [vmem:[%s3382_s1 + $0x30] sm:$0x3]  ;;  %v1858_v2 = vld [vmem:[%s3382_s1 + $0x98] sm:$0x3] }
   0x2   :  { %v83_v3 = vunpack.c.l.b16 %v1785_v0  ;;  %v149_v4 = vunpack.c.l.b16 %v35_v1  ;;  %v230_v5 = vunpack.c.l.b16 %v1858_v2  ;;  %v1902_v6 = vld [vmem:[%s3382_s1 + $0xcc] sm:$0x3]  ;;  %v2662_v16 = vld [vmem:[%s3382_s1 + $0x5c] sm:$0xff]  ;;  %v2669_v18 = vld [vmem:[%s3382_s1 + $0x90] sm:$0xff]  ;;  %vm1740_vm4 = vcmask 80896  }
   0x3   :  { %v313_v7 = vunpack.c.l.b16 %v1902_v6  ;;  %v2655_v17 = vld [vmem:[%s3382_s1 + $0x28] sm:$0xff]  ;;  %v2661_v20 = vld [vmem:[%s3382_s1 + $0x54] sm:$0xff]  ;;  %v2654_v21 = vld [vmem:[%s3382_s1 + $0x20] sm:$0xff] }
   0x4   :  { %v90_v8 = vpack.c.b16 %v83_v3, %v83_v3  ;;  %v156_v9 = vpack.c.b16 %v149_v4, %v149_v4  ;;  %v237_v10 = vpack.c.b16 %v230_v5, %v230_v5  ;;  %v2676_v19 = vld [vmem:[%s3382_s1 + $0xc4] sm:$0xff]  ;;  %v2675_v23 = vld [vmem:[%s3382_s1 + $0xbc] sm:$0xff]  ;;  %v2660_v24 = vld [vmem:[%s3382_s1 + $0x4c] sm:$0xff] }
   0x5   :  { %v320_v11 = vpack.c.b16 %v313_v7, %v313_v7  ;;  %v2668_v22 = vld [vmem:[%s3382_s1 + $0x88] sm:$0xff]  ;;  %v2653_v25 = vld [vmem:[%s3382_s1 + $0x18] sm:$0xff]  ;;  %v2667_v26 = vld [vmem:[%s3382_s1 + $0x80] sm:$0xff] }
   0x6   :  { %v103_v12 = vsel %vm101_vm0, %v90_v8, 0  ;;  %v167_v13 = vsel %vm101_vm0, %v156_v9, 0  ;;  %v248_v14 = vsel %vm101_vm0, %v237_v10, 0  ;;  %v2674_v27 = vld [vmem:[%s3382_s1 + $0xb4] sm:$0xff]  ;;  %v2659_v28 = vld [vmem:[%s3382_s1 + $0x44] sm:$0xff]  ;;  %v2673_v33 = vld [vmem:[%s3382_s1 + $0xac] sm:$0xff] }
   0x7   :  { %106 = vmatpush.bf16.msra.mxu0 %v103_v12  ;;  %170 = vmatpush.bf16.msra.mxu1 %v167_v13  ;;  %v331_v15 = vsel %vm101_vm0, %v320_v11, 0  ;;  %v2652_v29 = vld [vmem:[%s3382_s1 + $0x10] sm:$0xff]  ;;  %v2666_v30 = vld [vmem:[%s3382_s1 + $0x78] sm:$0xff]  ;;  %v1946_v31 = vld [vmem:[%s3382_s1 + $0x100] sm:$0x3] }
   0x8   :  { %251 = vmatpush.bf16.msra.mxu2 %v248_v14  ;;  %334 = vmatpush.bf16.msra.mxu3 %v331_v15  ;;  %v1990_v32 = vld [vmem:[%s3382_s1 + $0x134] sm:$0x3]  ;;  %v2034_v34 = vld [vmem:[%s3382_s1 + $0x168] sm:$0x3]  ;;  %v2078_v35 = vld [vmem:[%s3382_s1 + $0x19c] sm:$0x3]  ;;  %v396_v36 = vunpack.c.l.b16 %v1946_v31 }
   0x9   :  { %v479_v37 = vunpack.c.l.b16 %v1990_v32  ;;  %v2658_v38 = vld [vmem:[%s3382_s1 + $0x3c] sm:$0xff]  ;;  %v2651_v39 = vld [vmem:[%s3382_s1 + $0x8] sm:$0xff]  ;;  %v562_v40 = vunpack.c.l.b16 %v2034_v34  ;;  %v645_v41 = vunpack.c.l.b16 %v2078_v35  ;;  %v2665_v42 = vld [vmem:[%s3382_s1 + $0x70] sm:$0xff] }
   0xa   :  { %v2672_v43 = vld [vmem:[%s3382_s1 + $0xa4] sm:$0xff]  ;;  %v403_v44 = vpack.c.b16 %v396_v36, %v396_v36  ;;  %v2657_v46 = vld [vmem:[%s3382_s1 + $0x34] sm:$0xff]  ;;  %v2671_v51 = vld [vmem:[%s3382_s1 + $0x9c] sm:$0xff] }
   0xb   :  { %107 = vmatpush.bf16.msra.mxu0 %v2662_v16  ;;  %171 = vmatpush.bf16.msra.mxu1 %v2655_v17  ;;  %v486_v45 = vpack.c.b16 %v479_v37, %v479_v37  ;;  %v2650_v47 = vld [vmem:[%s3382_s1] sm:$0xff]  ;;  %v569_v48 = vpack.c.b16 %v562_v40, %v562_v40  ;;  %v652_v49 = vpack.c.b16 %v645_v41, %v645_v41  ;;  %v2664_v50 = vld [vmem:[%s3382_s1 + $0x68] sm:$0xff]  ;;  %v2663_v57 = vld [vmem:[%s3383_s0 + $0x10] sm:$0xff] }
   0xc   :  { %252 = vmatpush.bf16.msra.mxu2 %v2669_v18  ;;  %335 = vmatpush.bf16.msra.mxu3 %v2676_v19  ;;  %v414_v52 = vsel %vm101_vm0, %v403_v44, 0  ;;  %v2656_v56 = vld [vmem:[%s3383_s0 + $0x8] sm:$0xff]  ;;  %v2649_v58 = vld [vmem:[%s3383_s0] sm:$0xff]  ;;  %v2670_v59 = vld [vmem:[%s3383_s0 + $0x18] sm:$0xff] }
   0xd   :  { %v497_v53 = vsel %vm101_vm0, %v486_v45, 0  ;;  %v580_v54 = vsel %vm101_vm0, %v569_v48, 0  ;;  %v663_v55 = vsel %vm101_vm0, %v652_v49, 0  ;;  %v2683_v60 = vld [vmem:[%s3382_s1 + $0xf8] sm:$0xff]  ;;  %v2690_v61 = vld [vmem:[%s3382_s1 + $0x12c] sm:$0xff]  ;;  %v2697_v62 = vld [vmem:[%s3382_s1 + $0x160] sm:$0xff] }
   0xe   :  { %v2704_v63 = vld [vmem:[%s3382_s1 + $0x194] sm:$0xff]  ;;  %v2689_v1 = vld [vmem:[%s3382_s1 + $0x124] sm:$0xff]  ;;  %v2703_v3 = vld [vmem:[%s3382_s1 + $0x18c] sm:$0xff] }
   0xf   :  { %108 = vmatpush.bf16.msra.mxu0 %v2661_v20  ;;  %172 = vmatpush.bf16.msra.mxu1 %v2654_v21  ;;  %v2682_v0 = vld [vmem:[%s3382_s1 + $0xf0] sm:$0xff]  ;;  %v2696_v2 = vld [vmem:[%s3382_s1 + $0x158] sm:$0xff]  ;;  %v2681_v4 = vld [vmem:[%s3382_s1 + $0xe8] sm:$0xff] }
  0x10   :  { %253 = vmatpush.bf16.msra.mxu2 %v2668_v22  ;;  %336 = vmatpush.bf16.msra.mxu3 %v2675_v23  ;;  %v2688_v5 = vld [vmem:[%s3382_s1 + $0x11c] sm:$0xff]  ;;  %v2695_v6 = vld [vmem:[%s3382_s1 + $0x150] sm:$0xff]  ;;  %v2702_v7 = vld [vmem:[%s3382_s1 + $0x184] sm:$0xff] }
  0x11   :  { %v2680_v8 = vld [vmem:[%s3382_s1 + $0xe0] sm:$0xff]  ;;  %v2687_v9 = vld [vmem:[%s3382_s1 + $0x114] sm:$0xff]  ;;  %v2694_v10 = vld [vmem:[%s3382_s1 + $0x148] sm:$0xff] }
  0x12   :  { %v2122_v11 = vld [vmem:[%s3382_s1 + $0x1d0] sm:$0x3]  ;;  %v2166_v12 = vld [vmem:[%s3382_s1 + $0x204] sm:$0x3]  ;;  %v2701_v13 = vld [vmem:[%s3382_s1 + $0x17c] sm:$0xff] }
  0x13   :  { %109 = vmatpush.bf16.msra.mxu0 %v2660_v24  ;;  %173 = vmatpush.bf16.msra.mxu1 %v2653_v25  ;;  %v2210_v14 = vld [vmem:[%s3382_s1 + $0x238] sm:$0x3]  ;;  %v2254_v15 = vld [vmem:[%s3382_s1 + $0x26c] sm:$0x3]  ;;  %v728_v16 = vunpack.c.l.b16 %v2122_v11  ;;  %v811_v17 = vunpack.c.l.b16 %v2166_v12  ;;  %v2693_v22 = vld [vmem:[%s3382_s1 + $0x140] sm:$0xff] }
  0x14   :  { %254 = vmatpush.bf16.msra.mxu2 %v2667_v26  ;;  %337 = vmatpush.bf16.msra.mxu3 %v2674_v27  ;;  %v2679_v18 = vld [vmem:[%s3382_s1 + $0xd8] sm:$0xff]  ;;  %v2686_v19 = vld [vmem:[%s3382_s1 + $0x10c] sm:$0xff]  ;;  %v894_v20 = vunpack.c.l.b16 %v2210_v14  ;;  %v977_v21 = vunpack.c.l.b16 %v2254_v15  ;;  %v2685_v27 = vld [vmem:[%s3382_s1 + $0x104] sm:$0xff] }
  0x15   :  { %v2700_v23 = vld [vmem:[%s3382_s1 + $0x174] sm:$0xff]  ;;  %v735_v24 = vpack.c.b16 %v728_v16, %v728_v16  ;;  %v818_v25 = vpack.c.b16 %v811_v17, %v811_v17  ;;  %v2699_v31 = vld [vmem:[%s3382_s1 + $0x16c] sm:$0xff]  ;;  %v2677_v36 = vld [vmem:[%s3383_s0 + $0x20] sm:$0xff] }
  0x16   :  { %v2678_v26 = vld [vmem:[%s3382_s1 + $0xd0] sm:$0xff]  ;;  %v2711_v40 = vld [vmem:[%s3382_s1 + $0x1c8] sm:$0xff]  ;;  %v2718_v41 = vld [vmem:[%s3382_s1 + $0x1fc] sm:$0xff] }
  0x17   :  { %110 = vmatpush.bf16.msra.mxu0 %v2659_v28  ;;  %174 = vmatpush.bf16.msra.mxu1 %v2652_v29  ;;  %v901_v28 = vpack.c.b16 %v894_v20, %v894_v20  ;;  %v984_v29 = vpack.c.b16 %v977_v21, %v977_v21  ;;  %v746_v32 = vsel %vm101_vm0, %v735_v24, 0  ;;  %v2691_v37 = vld [vmem:[%s3383_s0 + $0x30] sm:$0xff]  ;;  %v2710_v44 = vld [vmem:[%s3382_s1 + $0x1c0] sm:$0xff]  ;;  %v2709_v48 = vld [vmem:[%s3382_s1 + $0x1b8] sm:$0xff] }
  0x18   :  { %255 = vmatpush.bf16.msra.mxu2 %v2666_v30  ;;  %338 = vmatpush.bf16.msra.mxu3 %v2673_v33  ;;  %v2692_v30 = vld [vmem:[%s3382_s1 + $0x138] sm:$0xff]  ;;  %v829_v33 = vsel %vm101_vm0, %v818_v25, 0  ;;  %v2716_v49 = vld [vmem:[%s3382_s1 + $0x1ec] sm:$0xff]  ;;  %v2705_v16 = vld [vmem:[%s3383_s0 + $0x40] sm:$0xff] }
  0x19   :  { %v912_v34 = vsel %vm101_vm0, %v901_v28, 0  ;;  %v995_v35 = vsel %vm101_vm0, %v984_v29, 0  ;;  %v2717_v45 = vld [vmem:[%s3382_s1 + $0x1f4] sm:$0xff]  ;;  %v2727_v11 = vld [vmem:[%s3382_s1 + $0x23c] sm:$0xff]  ;;  %v2746_v21 = vld [vmem:[%s3382_s1 + $0x2cc] sm:$0xff] }
  0x1a   :  { %v2719_v17 = vld [vmem:[%s3383_s0 + $0x50] sm:$0xff]  ;;  %v2739_v20 = vld [vmem:[%s3382_s1 + $0x298] sm:$0xff]  ;;  %v2745_v25 = vld [vmem:[%s3382_s1 + $0x2c4] sm:$0xff] }
  0x1b   :  { %111 = vmatpush.bf16.msra.mxu0 %v2658_v38  ;;  %175 = vmatpush.bf16.msra.mxu1 %v2651_v39  ;;  %v2684_v38 = vld [vmem:[%s3383_s0 + $0x28] sm:$0xff]  ;;  %v2698_v39 = vld [vmem:[%s3383_s0 + $0x38] sm:$0xff]  ;;  %v2738_v24 = vld [vmem:[%s3382_s1 + $0x290] sm:$0xff] }
  0x1c   :  { %256 = vmatpush.bf16.msra.mxu2 %v2665_v42  ;;  %339 = vmatpush.bf16.msra.mxu3 %v2672_v43  ;;  %v2725_v42 = vld [vmem:[%s3382_s1 + $0x230] sm:$0xff]  ;;  %v2732_v43 = vld [vmem:[%s3382_s1 + $0x264] sm:$0xff]  ;;  %v2744_v29 = vld [vmem:[%s3382_s1 + $0x2bc] sm:$0xff] }
  0x1d   :  { %v2737_v28 = vld [vmem:[%s3382_s1 + $0x288] sm:$0xff] }
  0x1f   :  { %112 = vmatpush.bf16.msra.mxu0 %v2657_v46  ;;  %176 = vmatpush.bf16.msra.mxu1 %v2650_v47  ;;  %v2724_v46 = vld [vmem:[%s3382_s1 + $0x228] sm:$0xff]  ;;  %v2731_v47 = vld [vmem:[%s3382_s1 + $0x25c] sm:$0xff] }
  0x20   :  { %257 = vmatpush.bf16.msra.mxu2 %v2664_v50  ;;  %340 = vmatpush.bf16.msra.mxu3 %v2671_v51  ;;  %v2723_v50 = vld [vmem:[%s3382_s1 + $0x220] sm:$0xff]  ;;  %v2730_v51 = vld [vmem:[%s3382_s1 + $0x254] sm:$0xff] }
  0x22   :  { %1814 = vmatmul.msk.bf16.vlgmr.msra.gmra.mxu0 %vm97_vm1, %v2656_v56  ;;  %1843 = vmatmul.msk.bf16.vlgmr.msra.gmra.mxu1 %vm97_vm1, %v2649_v58  ;;  %v2342_v56 = vld [vmem:[%s3382_s1 + $0x2d4] sm:$0x3]  ;;  %v2386_v58 = vld [vmem:[%s3382_s1 + $0x308] sm:$0x3] }
  0x23   :  { %417 = vmatpush.bf16.msrb.mxu0 %v414_v52  ;;  %500 = vmatpush.bf16.msrb.mxu1 %v497_v53  ;;  %v2708_v52 = vld [vmem:[%s3382_s1 + $0x1b0] sm:$0xff]  ;;  %v2715_v53 = vld [vmem:[%s3382_s1 + $0x1e4] sm:$0xff] }
  0x24   :  { %583 = vmatpush.bf16.msrb.mxu2 %v580_v54  ;;  %666 = vmatpush.bf16.msrb.mxu3 %v663_v55  ;;  %v2722_v54 = vld [vmem:[%s3382_s1 + $0x218] sm:$0xff]  ;;  %v2298_v55 = vld [vmem:[%s3382_s1 + $0x2a0] sm:$0x3] }
  0x25   :  { %1887 = vmatmul.msk.bf16.vlgmr.msra.gmra.mxu2 %vm97_vm1, %v2663_v57  ;;  %1931 = vmatmul.msk.bf16.vlgmr.msra.gmra.mxu3 %vm97_vm1, %v2670_v59  ;;  %v2729_v57 = vld [vmem:[%s3382_s1 + $0x24c] sm:$0xff]  ;;  %v2430_v59 = vld [vmem:[%s3382_s1 + $0x33c] sm:$0x3] }
  0x27   :  { %418 = vmatpush.bf16.msrb.mxu0 %v2683_v60  ;;  %501 = vmatpush.bf16.msrb.mxu1 %v2690_v61  ;;  %v1060_v60 = vunpack.c.l.b16 %v2298_v55  ;;  %v1143_v61 = vunpack.c.l.b16 %v2342_v56  ;;  %v2755_v55 = vld [vmem:[%s3382_s1 + $0x30c] sm:$0xff] }
  0x28   :  { %584 = vmatpush.bf16.msrb.mxu2 %v2697_v62  ;;  %667 = vmatpush.bf16.msrb.mxu3 %v2704_v63  ;;  %v2707_v62 = vld [vmem:[%s3382_s1 + $0x1a8] sm:$0xff]  ;;  %v2714_v63 = vld [vmem:[%s3382_s1 + $0x1dc] sm:$0xff] }
  0x2b   :  { %419 = vmatpush.bf16.msrb.mxu0 %v2682_v0  ;;  %502 = vmatpush.bf16.msrb.mxu1 %v2689_v1  ;;  %v1226_v0 = vunpack.c.l.b16 %v2386_v58  ;;  %v1309_v1 = vunpack.c.l.b16 %v2430_v59 }
  0x2c   :  { %585 = vmatpush.bf16.msrb.mxu2 %v2696_v2  ;;  %668 = vmatpush.bf16.msrb.mxu3 %v2703_v3  ;;  %v2721_v2 = vld [vmem:[%s3382_s1 + $0x210] sm:$0xff]  ;;  %v2728_v3 = vld [vmem:[%s3382_s1 + $0x244] sm:$0xff] }
  0x2f   :  { %420 = vmatpush.bf16.msrb.mxu0 %v2681_v4  ;;  %503 = vmatpush.bf16.msrb.mxu1 %v2688_v5  ;;  %v1067_v4 = vpack.c.b16 %v1060_v60, %v1060_v60  ;;  %v1150_v5 = vpack.c.b16 %v1143_v61, %v1143_v61  ;;  %v2733_v60 = vld [vmem:[%s3383_s0 + $0x60] sm:$0xff]  ;;  %v2747_v61 = vld [vmem:[%s3383_s0 + $0x70] sm:$0xff] }
  0x30   :  { %586 = vmatpush.bf16.msrb.mxu2 %v2695_v6  ;;  %669 = vmatpush.bf16.msrb.mxu3 %v2702_v7  ;;  %v2706_v6 = vld [vmem:[%s3382_s1 + $0x1a0] sm:$0xff]  ;;  %v2713_v7 = vld [vmem:[%s3382_s1 + $0x1d4] sm:$0xff] }
  0x31   :  { %v1078_v12 = vsel %vm101_vm0, %v1067_v4, 0  ;;  %v2766_v4 = vld [vmem:[%s3382_s1 + $0x360] sm:$0xff] }
  0x33   :  { %421 = vmatpush.bf16.msrb.mxu0 %v2680_v8  ;;  %504 = vmatpush.bf16.msrb.mxu1 %v2687_v9  ;;  %v1233_v8 = vpack.c.b16 %v1226_v0, %v1226_v0  ;;  %v1316_v9 = vpack.c.b16 %v1309_v1, %v1309_v1  ;;  %v2767_v0 = vld [vmem:[%s3382_s1 + $0x368] sm:$0xff]  ;;  %v2774_v1 = vld [vmem:[%s3382_s1 + $0x39c] sm:$0xff] }
  0x34   :  { %587 = vmatpush.bf16.msrb.mxu2 %v2694_v10  ;;  %670 = vmatpush.bf16.msrb.mxu3 %v2701_v13  ;;  %v2720_v10 = vld [vmem:[%s3382_s1 + $0x208] sm:$0xff]  ;;  %v1161_v13 = vsel %vm101_vm0, %v1150_v5, 0  ;;  %v2773_v5 = vld [vmem:[%s3382_s1 + $0x394] sm:$0xff] }
  0x35   :  { %v1244_v14 = vsel %vm101_vm0, %v1233_v8, 0  ;;  %v1327_v15 = vsel %vm101_vm0, %v1316_v9, 0  ;;  %v2765_v8 = vld [vmem:[%s3382_s1 + $0x358] sm:$0xff]  ;;  %v2772_v9 = vld [vmem:[%s3382_s1 + $0x38c] sm:$0xff] }
  0x37   :  { %422 = vmatpush.bf16.msrb.mxu0 %v2679_v18  ;;  %505 = vmatpush.bf16.msrb.mxu1 %v2686_v19  ;;  %v2712_v18 = vld [vmem:[%s3383_s0 + $0x48] sm:$0xff]  ;;  %v2726_v19 = vld [vmem:[%s3383_s0 + $0x58] sm:$0xff] }
  0x38   :  { %588 = vmatpush.bf16.msrb.mxu2 %v2693_v22  ;;  %671 = vmatpush.bf16.msrb.mxu3 %v2700_v23  ;;  %v2753_v22 = vld [vmem:[%s3382_s1 + $0x300] sm:$0xff]  ;;  %v2760_v23 = vld [vmem:[%s3382_s1 + $0x334] sm:$0xff] }
  0x3b   :  { %423 = vmatpush.bf16.msrb.mxu0 %v2678_v26  ;;  %506 = vmatpush.bf16.msrb.mxu1 %v2685_v27  ;;  %v2752_v26 = vld [vmem:[%s3382_s1 + $0x2f8] sm:$0xff]  ;;  %v2759_v27 = vld [vmem:[%s3382_s1 + $0x32c] sm:$0xff] }
  0x3c   :  { %589 = vmatpush.bf16.msrb.mxu2 %v2692_v30  ;;  %672 = vmatpush.bf16.msrb.mxu3 %v2699_v31  ;;  %v2751_v30 = vld [vmem:[%s3382_s1 + $0x2f0] sm:$0xff]  ;;  %v2758_v31 = vld [vmem:[%s3382_s1 + $0x324] sm:$0xff] }
  0x3e   :  { %1975 = vmatmul.msk.bf16.vlgmr.msrb.gmra.mxu0 %vm97_vm1, %v2677_v36  ;;  %2019 = vmatmul.msk.bf16.vlgmr.msrb.gmra.mxu1 %vm97_vm1, %v2684_v38  ;;  %v2518_v36 = vld [vmem:[%s3382_s1 + $0x3a4] sm:$0x3]  ;;  %v2562_v38 = vld [vmem:[%s3382_s1 + $0x3d8] sm:$0x3] }
  0x3f   :  { %749 = vmatpush.bf16.msra.mxu0 %v746_v32  ;;  %832 = vmatpush.bf16.msra.mxu1 %v829_v33  ;;  %v2736_v32 = vld [vmem:[%s3382_s1 + $0x280] sm:$0xff]  ;;  %v2743_v33 = vld [vmem:[%s3382_s1 + $0x2b4] sm:$0xff] }
  0x40   :  { %915 = vmatpush.bf16.msra.mxu2 %v912_v34  ;;  %998 = vmatpush.bf16.msra.mxu3 %v995_v35  ;;  %v2750_v34 = vld [vmem:[%s3382_s1 + $0x2e8] sm:$0xff]  ;;  %v2474_v35 = vld [vmem:[%s3382_s1 + $0x370] sm:$0x3] }
  0x41   :  { %2063 = vmatmul.msk.bf16.vlgmr.msrb.gmra.mxu2 %vm97_vm1, %v2691_v37  ;;  %2107 = vmatmul.msk.bf16.vlgmr.msrb.gmra.mxu3 %vm97_vm1, %v2698_v39  ;;  %v2757_v37 = vld [vmem:[%s3382_s1 + $0x31c] sm:$0xff]  ;;  %v2606_v39 = vld [vmem:[%s3382_s1 + $0x40c] sm:$0x3] }
  0x43   :  { %750 = vmatpush.bf16.msra.mxu0 %v2711_v40  ;;  %833 = vmatpush.bf16.msra.mxu1 %v2718_v41  ;;  %v1392_v40 = vunpack.c.l.b16 %v2474_v35  ;;  %v1475_v41 = vunpack.c.l.b16 %v2518_v36 }
  0x44   :  { %916 = vmatpush.bf16.msra.mxu2 %v2725_v42  ;;  %999 = vmatpush.bf16.msra.mxu3 %v2732_v43  ;;  %v2735_v42 = vld [vmem:[%s3382_s1 + $0x278] sm:$0xff]  ;;  %v2742_v43 = vld [vmem:[%s3382_s1 + $0x2ac] sm:$0xff] }
  0x47   :  { %751 = vmatpush.bf16.msra.mxu0 %v2710_v44  ;;  %834 = vmatpush.bf16.msra.mxu1 %v2717_v45  ;;  %v1558_v44 = vunpack.c.l.b16 %v2562_v38  ;;  %v1641_v45 = vunpack.c.l.b16 %v2606_v39 }
  0x48   :  { %917 = vmatpush.bf16.msra.mxu2 %v2724_v46  ;;  %1000 = vmatpush.bf16.msra.mxu3 %v2731_v47  ;;  %v2749_v46 = vld [vmem:[%s3382_s1 + $0x2e0] sm:$0xff]  ;;  %v2756_v47 = vld [vmem:[%s3382_s1 + $0x314] sm:$0xff] }
  0x4b   :  { %752 = vmatpush.bf16.msra.mxu0 %v2709_v48  ;;  %835 = vmatpush.bf16.msra.mxu1 %v2716_v49  ;;  %v1399_v48 = vpack.c.b16 %v1392_v40, %v1392_v40  ;;  %v1482_v49 = vpack.c.b16 %v1475_v41, %v1475_v41 }
  0x4c   :  { %918 = vmatpush.bf16.msra.mxu2 %v2723_v50  ;;  %1001 = vmatpush.bf16.msra.mxu3 %v2730_v51  ;;  %v2734_v50 = vld [vmem:[%s3382_s1 + $0x270] sm:$0xff]  ;;  %v2741_v51 = vld [vmem:[%s3382_s1 + $0x2a4] sm:$0xff] }
  0x4d   :  { %v1410_v56 = vsel %vm101_vm0, %v1399_v48, 0 }
  0x4f   :  { %753 = vmatpush.bf16.msra.mxu0 %v2708_v52  ;;  %836 = vmatpush.bf16.msra.mxu1 %v2715_v53  ;;  %v1565_v52 = vpack.c.b16 %v1558_v44, %v1558_v44  ;;  %v1648_v53 = vpack.c.b16 %v1641_v45, %v1641_v45 }
  0x50   :  { %919 = vmatpush.bf16.msra.mxu2 %v2722_v54  ;;  %1002 = vmatpush.bf16.msra.mxu3 %v2729_v57  ;;  %v2748_v54 = vld [vmem:[%s3382_s1 + $0x2d8] sm:$0xff]  ;;  %v1493_v57 = vsel %vm101_vm0, %v1482_v49, 0 }
  0x51   :  { %v1576_v58 = vsel %vm101_vm0, %v1565_v52, 0  ;;  %v1659_v59 = vsel %vm101_vm0, %v1648_v53, 0 }
  0x53   :  { %754 = vmatpush.bf16.msra.mxu0 %v2707_v62  ;;  %837 = vmatpush.bf16.msra.mxu1 %v2714_v63  ;;  %v2740_v62 = vld [vmem:[%s3383_s0 + $0x68] sm:$0xff]  ;;  %v2754_v63 = vld [vmem:[%s3383_s0 + $0x78] sm:$0xff] }
  0x54   :  { %920 = vmatpush.bf16.msra.mxu2 %v2721_v2  ;;  %1003 = vmatpush.bf16.msra.mxu3 %v2728_v3  ;;  %v2781_v2 = vld [vmem:[%s3382_s1 + $0x3d0] sm:$0xff]  ;;  %v2788_v3 = vld [vmem:[%s3382_s1 + $0x404] sm:$0xff] }
  0x57   :  { %755 = vmatpush.bf16.msra.mxu0 %v2706_v6  ;;  %838 = vmatpush.bf16.msra.mxu1 %v2713_v7  ;;  %v2780_v6 = vld [vmem:[%s3382_s1 + $0x3c8] sm:$0xff]  ;;  %v2787_v7 = vld [vmem:[%s3382_s1 + $0x3fc] sm:$0xff] }
  0x58   :  { %921 = vmatpush.bf16.msra.mxu2 %v2720_v10  ;;  %1004 = vmatpush.bf16.msra.mxu3 %v2727_v11  ;;  %v2779_v10 = vld [vmem:[%s3382_s1 + $0x3c0] sm:$0xff]  ;;  %v2786_v11 = vld [vmem:[%s3382_s1 + $0x3f4] sm:$0xff] }
  0x5a   :  { %2151 = vmatmul.msk.bf16.vlgmr.msra.gmra.mxu0 %vm97_vm1, %v2705_v16  ;;  %2195 = vmatmul.msk.bf16.vlgmr.msra.gmra.mxu1 %vm97_vm1, %v2712_v18  ;;  %v2763_v16 = vld [vmem:[%s3382_s1 + $0x348] sm:$0xff]  ;;  %v2777_v18 = vld [vmem:[%s3382_s1 + $0x3b0] sm:$0xff] }
  0x5b   :  { %1081 = vmatpush.bf16.msrb.mxu0 %v1078_v12  ;;  %1164 = vmatpush.bf16.msrb.mxu1 %v1161_v13  ;;  %v2764_v12 = vld [vmem:[%s3382_s1 + $0x350] sm:$0xff]  ;;  %v2771_v13 = vld [vmem:[%s3382_s1 + $0x384] sm:$0xff] }
  0x5c   :  { %1247 = vmatpush.bf16.msrb.mxu2 %v1244_v14  ;;  %1330 = vmatpush.bf16.msrb.mxu3 %v1327_v15  ;;  %v2778_v14 = vld [vmem:[%s3382_s1 + $0x3b8] sm:$0xff]  ;;  %v2785_v15 = vld [vmem:[%s3382_s1 + $0x3ec] sm:$0xff] }
  0x5d   :  { %2239 = vmatmul.msk.bf16.vlgmr.msra.gmra.mxu2 %vm97_vm1, %v2719_v17  ;;  %2283 = vmatmul.msk.bf16.vlgmr.msra.gmra.mxu3 %vm97_vm1, %v2726_v19  ;;  %v2770_v17 = vld [vmem:[%s3382_s1 + $0x37c] sm:$0xff]  ;;  %v2784_v19 = vld [vmem:[%s3382_s1 + $0x3e4] sm:$0xff] }
  0x5f   :  { %1082 = vmatpush.bf16.msrb.mxu0 %v2739_v20  ;;  %1165 = vmatpush.bf16.msrb.mxu1 %v2746_v21  ;;  %v2762_v20 = vld [vmem:[%s3382_s1 + $0x340] sm:$0xff]  ;;  %v2769_v21 = vld [vmem:[%s3382_s1 + $0x374] sm:$0xff] }
  0x60   :  { %1248 = vmatpush.bf16.msrb.mxu2 %v2753_v22  ;;  %1331 = vmatpush.bf16.msrb.mxu3 %v2760_v23  ;;  %v2776_v22 = vld [vmem:[%s3382_s1 + $0x3a8] sm:$0xff]  ;;  %v2783_v23 = vld [vmem:[%s3382_s1 + $0x3dc] sm:$0xff] }
  0x63   :  { %1083 = vmatpush.bf16.msrb.mxu0 %v2738_v24  ;;  %1166 = vmatpush.bf16.msrb.mxu1 %v2745_v25  ;;  %v2761_v24 = vld [vmem:[%s3383_s0 + $0x80] sm:$0xff]  ;;  %v2768_v25 = vld [vmem:[%s3383_s0 + $0x88] sm:$0xff] }
  0x64   :  { %1249 = vmatpush.bf16.msrb.mxu2 %v2752_v26  ;;  %1332 = vmatpush.bf16.msrb.mxu3 %v2759_v27  ;;  %v2775_v26 = vld [vmem:[%s3383_s0 + $0x90] sm:$0xff]  ;;  %v2782_v27 = vld [vmem:[%s3383_s0 + $0x98] sm:$0xff] }
  0x67   :  { %1084 = vmatpush.bf16.msrb.mxu0 %v2737_v28  ;;  %1167 = vmatpush.bf16.msrb.mxu1 %v2744_v29 }
  0x68   :  { %1250 = vmatpush.bf16.msrb.mxu2 %v2751_v30  ;;  %1333 = vmatpush.bf16.msrb.mxu3 %v2758_v31 }
  0x6b   :  { %1085 = vmatpush.bf16.msrb.mxu0 %v2736_v32  ;;  %1168 = vmatpush.bf16.msrb.mxu1 %v2743_v33 }
  0x6c   :  { %1251 = vmatpush.bf16.msrb.mxu2 %v2750_v34  ;;  %1334 = vmatpush.bf16.msrb.mxu3 %v2757_v37 }
  0x6f   :  { %1086 = vmatpush.bf16.msrb.mxu0 %v2735_v42  ;;  %1169 = vmatpush.bf16.msrb.mxu1 %v2742_v43 }
  0x70   :  { %1252 = vmatpush.bf16.msrb.mxu2 %v2749_v46  ;;  %1335 = vmatpush.bf16.msrb.mxu3 %v2756_v47 }
  0x73   :  { %1087 = vmatpush.bf16.msrb.mxu0 %v2734_v50  ;;  %1170 = vmatpush.bf16.msrb.mxu1 %v2741_v51 }
  0x74   :  { %1253 = vmatpush.bf16.msrb.mxu2 %v2748_v54  ;;  %1336 = vmatpush.bf16.msrb.mxu3 %v2755_v55 }
  0x76   :  { %2327 = vmatmul.msk.bf16.vlgmr.msrb.gmra.mxu0 %vm97_vm1, %v2733_v60  ;;  %2371 = vmatmul.msk.bf16.vlgmr.msrb.gmra.mxu1 %vm97_vm1, %v2740_v62 }
  0x77   :  { %1413 = vmatpush.bf16.msra.mxu0 %v1410_v56  ;;  %1496 = vmatpush.bf16.msra.mxu1 %v1493_v57  ;;  %v1692_v56 = vld [vmem:[%s3386_s3 + $0x18] sm:$0x1] }
  0x78   :  { %1579 = vmatpush.bf16.msra.mxu2 %v1576_v58  ;;  %1662 = vmatpush.bf16.msra.mxu3 %v1659_v59  ;;  %v1710_v60 = vunpack.c.l.b16 %v1692_v56 }
  0x79   :  { %2415 = vmatmul.msk.bf16.vlgmr.msrb.gmra.mxu2 %vm97_vm1, %v2747_v61  ;;  %2459 = vmatmul.msk.bf16.vlgmr.msrb.gmra.mxu3 %vm97_vm1, %v2754_v63 }
  0x7a   :  { %v1714_v61 = vpack.c.b16 %v1710_v60, %v1710_v60 }
  0x7b   :  { %1414 = vmatpush.bf16.msra.mxu0 %v2767_v0  ;;  %1497 = vmatpush.bf16.msra.mxu1 %v2774_v1 }
  0x7c   :  { %1580 = vmatpush.bf16.msra.mxu2 %v2781_v2  ;;  %1663 = vmatpush.bf16.msra.mxu3 %v2788_v3  ;;  %v1724_v1 = vsel %vm1722_vm2, %v1714_v61, 0 }
  0x7f   :  { %1415 = vmatpush.bf16.msra.mxu0 %v2766_v4  ;;  %1498 = vmatpush.bf16.msra.mxu1 %v2773_v5 }
  0x80   :  { %1581 = vmatpush.bf16.msra.mxu2 %v2780_v6  ;;  %1664 = vmatpush.bf16.msra.mxu3 %v2787_v7  ;;  %v2791_v6 = vld [vmem:[%s3386_s3 + $0x10] sm:$0xff] }
  0x83   :  { %1416 = vmatpush.bf16.msra.mxu0 %v2765_v8  ;;  %1499 = vmatpush.bf16.msra.mxu1 %v2772_v9 }
  0x84   :  { %1582 = vmatpush.bf16.msra.mxu2 %v2779_v10  ;;  %1665 = vmatpush.bf16.msra.mxu3 %v2786_v11  ;;  %v2790_v11 = vld [vmem:[%s3386_s3 + $0x8] sm:$0xff] }
  0x87   :  { %1417 = vmatpush.bf16.msra.mxu0 %v2764_v12  ;;  %1500 = vmatpush.bf16.msra.mxu1 %v2771_v13 }
  0x88   :  { %1583 = vmatpush.bf16.msra.mxu2 %v2778_v14  ;;  %1666 = vmatpush.bf16.msra.mxu3 %v2785_v15 }
  0x8b   :  { %1418 = vmatpush.bf16.msra.mxu0 %v2763_v16  ;;  %1501 = vmatpush.bf16.msra.mxu1 %v2770_v17  ;;  %v2789_v16 = vld [vmem:[%s3386_s3] sm:$0xff] }
  0x8c   :  { %1584 = vmatpush.bf16.msra.mxu2 %v2777_v18  ;;  %1667 = vmatpush.bf16.msra.mxu3 %v2784_v19 }
  0x8f   :  { %1419 = vmatpush.bf16.msra.mxu0 %v2762_v20  ;;  %1502 = vmatpush.bf16.msra.mxu1 %v2769_v21 }
  0x90   :  { %1585 = vmatpush.bf16.msra.mxu2 %v2776_v22  ;;  %1668 = vmatpush.bf16.msra.mxu3 %v2783_v23 }
  0x92   :  { %2503 = vmatmul.msk.bf16.vlgmr.msra.gmra.mxu0 %vm97_vm1, %v2761_v24  ;;  %2547 = vmatmul.msk.bf16.vlgmr.msra.gmra.mxu1 %vm97_vm1, %v2768_v25 }
  0x93   :  { %2591 = vmatmul.msk.bf16.vlgmr.msra.gmra.mxu2 %vm97_vm1, %v2775_v26  ;;  %2635 = vmatmul.msk.bf16.vlgmr.msra.gmra.mxu3 %vm97_vm1, %v2782_v27 }
  0x94   :  { %1730 = vmatpush.bf16.msrb.mxu0 %v1724_v1 }
  0x98   :  { %1731 = vmatpush.bf16.msrb.mxu0 %v2791_v6 }
  0x9c   :  { %1732 = vmatpush.bf16.msrb.mxu0 %v2790_v11 }
  0x9f   :  { %v114_v28 = vpop.f32.mrf.mxu0  ;;  %v178_v29 = vpop.f32.mrf.mxu1 }
  0xa0   :  { %v179_v40 = vadd.f32 %v178_v29, %v114_v28  ;;  %1733 = vmatpush.bf16.msrb.mxu0 %v2789_v16 }
  0xa7   :  { %v116_v32 = vpop.f32.mrf.mxu0  ;;  %v180_v33 = vpop.f32.mrf.mxu1 }
  0xa8   :  { %v259_v30 = vpop.f32.mrf.mxu2  ;;  %v342_v31 = vpop.f32.mrf.mxu3  ;;  %v181_v47 = vadd.f32 %v180_v33, %v116_v32 }
  0xa9   :  { %v264_v42 = vadd.f32 %v259_v30, %v179_v40 }
  0xab   :  { %v347_v44 = vadd.f32 %v342_v31, %v264_v42 }
  0xb0   :  { %v261_v34 = vpop.f32.mrf.mxu2  ;;  %v344_v35 = vpop.f32.mrf.mxu3 }
  0xb1   :  { %v265_v51 = vadd.f32 %v261_v34, %v181_v47 }
  0xb3   :  { %v348_v55 = vadd.f32 %v344_v35, %v265_v51 }
  0xbb   :  { %v425_v36 = vpop.f32.mrf.mxu0  ;;  %v508_v37 = vpop.f32.mrf.mxu1 }
  0xbc   :  { %v430_v49 = vadd.f32 %v425_v36, %v347_v44  ;;  %v2792_v44 = vld [vmem:[%s3384_s2] ss:$0 sm:$0xff] }
  0xbe   :  { %v513_v52 = vadd.f32 %v508_v37, %v430_v49 }
  0xc3   :  { %v427_v41 = vpop.f32.mrf.mxu0  ;;  %v510_v43 = vpop.f32.mrf.mxu1 }
  0xc4   :  { %v591_v38 = vpop.f32.mrf.mxu2  ;;  %v674_v39 = vpop.f32.mrf.mxu3  ;;  %v431_v58 = vadd.f32 %v427_v41, %v348_v55  ;;  %v2793_v55 = vld [vmem:[%s3385_s4] ss:$0 sm:$0xff] }
  0xc5   :  { %v596_v57 = vadd.f32 %v591_v38, %v513_v52 }
  0xc6   :  { %v514_v0 = vadd.f32 %v510_v43, %v431_v58 }
  0xc7   :  { %v679_v63 = vadd.f32 %v674_v39, %v596_v57 }
  0xcc   :  { %v593_v45 = vpop.f32.mrf.mxu2  ;;  %v676_v46 = vpop.f32.mrf.mxu3 }
  0xcd   :  { %v597_v2 = vadd.f32 %v593_v45, %v514_v0 }
  0xcf   :  { %v680_v8 = vadd.f32 %v676_v46, %v597_v2 }
  0xd7   :  { %v757_v48 = vpop.f32.mrf.mxu0  ;;  %v840_v50 = vpop.f32.mrf.mxu1 }
  0xd8   :  { %v762_v3 = vadd.f32 %v757_v48, %v679_v63 }
  0xda   :  { %v845_v9 = vadd.f32 %v840_v50, %v762_v3 }
  0xdf   :  { %v759_v59 = vpop.f32.mrf.mxu0  ;;  %v842_v62 = vpop.f32.mrf.mxu1 }
  0xe0   :  { %v923_v53 = vpop.f32.mrf.mxu2  ;;  %v1006_v54 = vpop.f32.mrf.mxu3  ;;  %v763_v13 = vadd.f32 %v759_v59, %v680_v8 }
  0xe1   :  { %v928_v12 = vadd.f32 %v923_v53, %v845_v9 }
  0xe2   :  { %v846_v18 = vadd.f32 %v842_v62, %v763_v13 }
  0xe3   :  { %v1011_v17 = vadd.f32 %v1006_v54, %v928_v12 }
  0xe8   :  { %v925_v4 = vpop.f32.mrf.mxu2  ;;  %v1008_v5 = vpop.f32.mrf.mxu3 }
  0xe9   :  { %v929_v19 = vadd.f32 %v925_v4, %v846_v18 }
  0xeb   :  { %v1012_v23 = vadd.f32 %v1008_v5, %v929_v19 }
  0xf3   :  { %v1089_v7 = vpop.f32.mrf.mxu0  ;;  %v1172_v10 = vpop.f32.mrf.mxu1 }
  0xf4   :  { %v1094_v20 = vadd.f32 %v1089_v7, %v1011_v17 }
  0xf6   :  { %v1177_v24 = vadd.f32 %v1172_v10, %v1094_v20 }
  0xfb   :  { %v1091_v21 = vpop.f32.mrf.mxu0  ;;  %v1174_v22 = vpop.f32.mrf.mxu1 }
  0xfc   :  { %v1255_v14 = vpop.f32.mrf.mxu2  ;;  %v1338_v15 = vpop.f32.mrf.mxu3  ;;  %v1095_v26 = vadd.f32 %v1091_v21, %v1012_v23 }
  0xfd   :  { %v1260_v25 = vadd.f32 %v1255_v14, %v1177_v24 }
  0xfe   :  { %v1178_v31 = vadd.f32 %v1174_v22, %v1095_v26 }
  0xff   :  { %v1343_v30 = vadd.f32 %v1338_v15, %v1260_v25 }
 0x104   :  { %v1257_v27 = vpop.f32.mrf.mxu2  ;;  %v1340_v28 = vpop.f32.mrf.mxu3 }
 0x105   :  { %v1261_v33 = vadd.f32 %v1257_v27, %v1178_v31 }
 0x107   :  { %v1344_v37 = vadd.f32 %v1340_v28, %v1261_v33 }
 0x10f   :  { %v1421_v29 = vpop.f32.mrf.mxu0  ;;  %v1504_v32 = vpop.f32.mrf.mxu1 }
 0x110   :  { %v1426_v34 = vadd.f32 %v1421_v29, %v1343_v30 }
 0x112   :  { %v1509_v38 = vadd.f32 %v1504_v32, %v1426_v34 }
 0x116   :  { %v1587_v35 = vpop.f32.mrf.mxu2  ;;  %v1670_v36 = vpop.f32.mrf.mxu3 }
 0x117   :  { %v1423_v39 = vpop.f32.mrf.mxu0  ;;  %v1592_v40 = vadd.f32 %v1587_v35, %v1509_v38  ;;  %v1506_v42 = vpop.f32.mrf.mxu1 }
 0x118   :  { %v1427_v41 = vadd.f32 %v1423_v39, %v1344_v37 }
 0x119   :  { %v1675_v43 = vadd.f32 %v1670_v36, %v1592_v40 }
 0x11a   :  { %v1510_v45 = vadd.f32 %v1506_v42, %v1427_v41 }
 0x11b   :  { %v1681_v49 = vadd.f32 %v2792_v44, %v1675_v43 }
 0x11d   :  { %v1683_v52 = vmax.f32 %v1681_v49, 0.0 }
 0x11e   :  { %v1589_v46 = vpop.f32.mrf.mxu2  ;;  %v1672_v48 = vpop.f32.mrf.mxu3 }
 0x11f   :  { %v1593_v47 = vadd.f32 %v1589_v46, %v1510_v45 }
 0x121   :  { %v1676_v50 = vadd.f32 %v1672_v48, %v1593_v47 }
 0x123   :  { %v1682_v51 = vadd.f32 %v2792_v44, %v1676_v50 }
 0x125   :  { %v1684_v53 = vmax.f32 %v1682_v51, 0.0 }
 0x127   :  { %v1685_v54 = vpack.c.bf16 %v1684_v53, %v1683_v52 }
 0x129   :  { %2648 = vmatmul.msk.bf16.vlgmr.msrb.gmra.mxu0 %vm1718_vm3, %v1685_v54 }
 0x1a6   :  { %v1735_v56 = vpop.f32.mrf.mxu0 }
 0x1a7   :  { %v1736_v57 = vadd.f32 %v2793_v55, %v1735_v56 }
 0x1a9   :  { %v1741_v58 = vsel %vm1740_vm4, %v1736_v57, -inf }
 0x1aa   :  { %1742 = vmax.xlane.f32.xlu0 %v1741_v58 }
 0x1ae   :  { %v1737_v59 = vpop.f32.mrf.mxu0 }
 0x1af   :  { %v1738_v60 = vadd.f32 %v2793_v55, %v1737_v59 }
 0x1b1   :  { %v1744_v61 = vsel %vm1740_vm4, %v1738_v60, -inf }
 0x1b2   :  { %1745 = vmax.xlane.f32.xlu0 %v1744_v61 }
 0x21d   :  { %v1743_v62 = vpop.xlane.xlu0 %1742 }
 0x21e   :  { %v1747_v63 = vsub.f32 %v1736_v57, %v1743_v62 }
 0x220   :  { %v1749_v0 = vmul.f32 1.442695, %v1747_v63 }
 0x222   :  { %2794 = vpow2.f32 %v1749_v0 }
 0x225   :  { %v1746_v1 = vpop.xlane.xlu0 %1745 }
 0x226   :  { %v1748_v2 = vsub.f32 %v1738_v60, %v1746_v1 }
 0x228   :  { %v2795_v3 = vpop.eup %2794  ;;  %v1751_v4 = vmul.f32 1.442695, %v1748_v2 }
 0x229   :  { %v1753_v5 = vsel %vm1740_vm4, %v2795_v3, 0.0 }
 0x22a   :  { %2796 = vpow2.f32 %v1751_v4  ;;  %1754 = vadd.xlane.f32.xlu1 %v1753_v5 }
 0x230   :  { %v2797_v6 = vpop.eup %2796 }
 0x231   :  { %v1756_v7 = vsel %vm1740_vm4, %v2797_v6, 0.0 }
 0x232   :  { %1757 = vadd.xlane.f32.xlu1 %v1756_v7 }
 0x29d   :  { %v1755_v8 = vpop.xlane.xlu1 %1754 }
 0x29e   :  { %2798 = vlog2.f32 %v1755_v8 }
 0x2a4   :  { %v2799_v9 = vpop.eup %2798 }
 0x2a5   :  { %v1760_v10 = vmul.f32 0.6931472, %v2799_v9  ;;  %v1758_v11 = vpop.xlane.xlu1 %1757 }
 0x2a6   :  { %2800 = vlog2.f32 %v1758_v11 }
 0x2a7   :  { %v1763_v12 = vsub.f32 %v1747_v63, %v1760_v10 }
 0x2a9   :  { %1765 = vst.msk [vmem:[%s3387_s5] sm:$0xff] %vm1740_vm4, %v1763_v12 }
 0x2ac   :  { %v2801_v13 = vpop.eup %2800 }
 0x2ad   :  { %v1762_v14 = vmul.f32 0.6931472, %v2801_v13 }
 0x2af   :  { %v1764_v15 = vsub.f32 %v1748_v2, %v1762_v14 }
 0x2b1   :  { %1766 = vst.msk [vmem:[%s3387_s5 + $0x8] sm:$0xff] %vm1740_vm4, %v1764_v15 }

</bundles_post_ra>
